<compile_context>
chip_gen: v6e
topology: v6e:2x2x1
jax: 0.10.0
libtpu: 0.0.40
codegen_flags: <defaults>
</compile_context>

<pallas_src>
import jax
import jax.numpy as jnp
from jax.experimental import pallas as pl
from jax.experimental.pallas import tpu as pltpu

# Module hyper-parameters (small but structurally faithful: 8 layers, skip at
# layer 4, odd input/output feature sizes like the original 63 / 65).
NB_LAYERS = 8
HID_DIMS = 128
INPUT_DIMS = 63
NUM_JOINTS = 65
SKIP = NB_LAYERS // 2
USE_SIN = False  # nn.ReLU() branch of the original module

PAD_IN = 64     # input feature lanes padded 63 -> 64 (aligned DMAs / K)
PAD_OUT = 128   # joint lanes padded 65 -> 128 (lane-dense output stores)
NEG_INF = -1e30


def _activation(h):
    if USE_SIN:
        return jnp.sin(h)
    return jnp.maximum(h, 0.0)


def _pose_deform_kernel(*refs):
    # refs = (x, w0,b0, ..., wS_h,wS_x,bS, ..., w7,b7, w_out,b_out, out)
    x_ref = refs[0]
    out_ref = refs[-1]
    p = refs[1:-1]

    # bf16 operands for the MXU; accumulation stays f32.
    x0_bf = x_ref[...].astype(jnp.bfloat16)          # [tm, PAD_IN]
    h = x0_bf

    idx = 0
    for i in range(NB_LAYERS):
        if i == SKIP:
            # torch.cat([x, x0], dim=1) @ W  ==  x @ W[:hid] + x0 @ W[hid:]
            w_h = p[idx][...]
            w_x = p[idx + 1][...]
            b = p[idx + 2][...]
            idx += 3
            acc = (jnp.dot(h, w_h, preferred_element_type=jnp.float32)
                   + jnp.dot(x0_bf, w_x, preferred_element_type=jnp.float32)
                   + b)
        else:
            w = p[idx][...]
            b = p[idx + 1][...]
            idx += 2
            acc = jnp.dot(h, w, preferred_element_type=jnp.float32) + b
        # ReLU (or sin) in f32, then back to bf16 for the next MXU pass.
        h = _activation(acc).astype(jnp.bfloat16)

    w_out = p[idx][...]
    b_out = p[idx + 1][...]
    # padded logit columns carry b_out = -1e30 -> exp() underflows to 0
    logits = jnp.dot(h, w_out, preferred_element_type=jnp.float32) + b_out

    # softmax over dim=1 (the joint / lane axis), f32 epilogue
    m = jnp.max(logits, axis=1, keepdims=True)
    e = jnp.exp(logits - m)
    inv = pl.reciprocal(jnp.sum(e, axis=1, keepdims=True), approx=True)
    out_ref[...] = (e * inv).astype(out_ref.dtype)


def init_params(key):
    """Deterministic init mimicking nn.Linear's U(-1/sqrt(fan_in), +) scheme.

    Returned weights are [in_features, out_features] (x @ W convention)."""
    layer_dims = []
    for i in range(NB_LAYERS):
        if i == 0:
            din = INPUT_DIMS
        elif i == SKIP:
            din = HID_DIMS + INPUT_DIMS
        else:
            din = HID_DIMS
        layer_dims.append((din, HID_DIMS))
    layer_dims.append((HID_DIMS, NUM_JOINTS))  # weight_out

    params = []
    for (din, dout) in layer_dims:
        key, kw, kb = jax.random.split(key, 3)
        bound = 1.0 / float(din) ** 0.5
        w = jax.random.uniform(kw, (din, dout), jnp.float32, -bound, bound)
        b = jax.random.uniform(kb, (1, dout), jnp.float32, -bound, bound)
        params.append((w, b))
    return params


def _pack_params(params):
    """Pad / split / bf16-cast the params into the layout the kernel expects."""
    flat = []
    for i in range(NB_LAYERS):
        w, b = params[i]
        if i == 0:
            w = jnp.pad(w, ((0, PAD_IN - INPUT_DIMS), (0, 0)))
            flat += [w.astype(jnp.bfloat16), b]
        elif i == SKIP:
            w_h = w[:HID_DIMS]
            w_x = jnp.pad(w[HID_DIMS:], ((0, PAD_IN - INPUT_DIMS), (0, 0)))
            flat += [w_h.astype(jnp.bfloat16), w_x.astype(jnp.bfloat16), b]
        else:
            flat += [w.astype(jnp.bfloat16), b]
    w_out, b_out = params[-1]
    w_out = jnp.pad(w_out, ((0, 0), (0, PAD_OUT - NUM_JOINTS)))
    b_out = jnp.pad(b_out, ((0, 0), (0, PAD_OUT - NUM_JOINTS)),
                    constant_values=NEG_INF)
    flat += [w_out.astype(jnp.bfloat16), b_out]
    return flat


def _choose_tm(n):
    # Prefer larger row tiles (better MXU fill, fewer per-step overheads on
    # v6e) while keeping >= 2 grid steps so both v7x TensorCores get work.
    for tm in (512, 256, 128):
        if n % tm == 0 and n // tm >= 2:
            return tm
    return n


def pose_deform_field(x, params, *, tm=None):
    """x: [N, INPUT_DIMS] float32 -> [N, NUM_JOINTS] float32 (softmaxed)."""
    N, D = x.shape
    assert D == INPUT_DIMS
    if tm is None:
        tm = _choose_tm(N)
    assert N % tm == 0

    x_pad = jnp.pad(x, ((0, 0), (0, PAD_IN - INPUT_DIMS)))
    flat_params = _pack_params(params)

    # Full-extent blocks (constant index_map) -> weights fetched once and
    # resident in VMEM across all grid steps.
    param_specs = [pl.BlockSpec(p.shape, lambda i: (0, 0)) for p in flat_params]

    grid_spec = pltpu.PrefetchScalarGridSpec(
        num_scalar_prefetch=0,
        grid=(N // tm,),
        in_specs=[pl.BlockSpec((tm, PAD_IN), lambda i: (i, 0))] + param_specs,
        out_specs=pl.BlockSpec((tm, PAD_OUT), lambda i: (i, 0)),
    )

    out_padded = pl.pallas_call(
        _pose_deform_kernel,
        out_shape=jax.ShapeDtypeStruct((N, PAD_OUT), jnp.float32),
        grid_spec=grid_spec,
        compiler_params=pltpu.CompilerParams(
            dimension_semantics=("parallel",)),
    )(x_pad, *flat_params)

    # drop the padded joint lanes (their softmax weight is exactly ~0)
    return out_padded[:, :NUM_JOINTS]


def pose_deform_field_ref(x, params):
    """Pure-JAX f32 reference matching the PyTorch forward."""
    x0 = x
    h = x
    for i in range(NB_LAYERS):
        w, b = params[i]
        if i == SKIP:
            h = jnp.concatenate([h, x0], axis=1)
        h = _activation(h @ w + b)
    w_out, b_out = params[-1]
    return jax.nn.softmax(h @ w_out + b_out, axis=1)


def pose_deform_field_bf16_ref(x, params):
    """Reference mirroring the kernel's bf16-matmul / f32-accumulate math."""
    x0 = x.astype(jnp.bfloat16)
    h = x0
    for i in range(NB_LAYERS):
        w, b = params[i]
        if i == SKIP:
            h = jnp.concatenate([h, x0], axis=1)
        acc = jnp.dot(h, w.astype(jnp.bfloat16),
                      preferred_element_type=jnp.float32) + b
        h = _activation(acc).astype(jnp.bfloat16)
    w_out, b_out = params[-1]
    logits = jnp.dot(h, w_out.astype(jnp.bfloat16),
                     preferred_element_type=jnp.float32) + b_out
    return jax.nn.softmax(logits, axis=1)


if __name__ == "__main__":
    key = jax.random.PRNGKey(0)
    kx, kp = jax.random.split(key)

    N = 256  # number of sample points; tm auto-chooses 128 -> grid of 2
    x = jax.random.normal(kx, (N, INPUT_DIMS), dtype=jnp.float32)
    params = init_params(kp)

    out = jax.block_until_ready(pose_deform_field(x, params))
    assert out.shape == (N, NUM_JOINTS)

    # rows of a softmax sum to 1 (approx reciprocal -> slightly loose)
    assert jnp.allclose(jnp.sum(out, axis=1), 1.0, atol=1e-2)

    # tight check vs a reference that uses the same bf16/f32 arithmetic
    ref_bf16 = pose_deform_field_bf16_ref(x, params)
    assert jnp.allclose(out, ref_bf16, atol=1e-2), \
        float(jnp.max(jnp.abs(out - ref_bf16)))

    # sanity check vs the pure-f32 reference (relaxed: bf16 matmuls)
    ref_f32 = pose_deform_field_ref(x, params)
    assert jnp.allclose(out, ref_f32, atol=5e-2), \
        float(jnp.max(jnp.abs(out - ref_f32)))

    print("KERNEL_OK")
</pallas_src>

<mosaic_0001>
module attributes {stable_mosaic.version = 11 : i64} {
  func.func @_pose_deform_kernel(%arg0: i32, %arg1: memref<128x64xf32, #tpu.memory_space<vmem>>, %arg2: memref<64x128xbf16, #tpu.memory_space<vmem>>, %arg3: memref<1x128xf32, #tpu.memory_space<vmem>>, %arg4: memref<128x128xbf16, #tpu.memory_space<vmem>>, %arg5: memref<1x128xf32, #tpu.memory_space<vmem>>, %arg6: memref<128x128xbf16, #tpu.memory_space<vmem>>, %arg7: memref<1x128xf32, #tpu.memory_space<vmem>>, %arg8: memref<128x128xbf16, #tpu.memory_space<vmem>>, %arg9: memref<1x128xf32, #tpu.memory_space<vmem>>, %arg10: memref<128x128xbf16, #tpu.memory_space<vmem>>, %arg11: memref<64x128xbf16, #tpu.memory_space<vmem>>, %arg12: memref<1x128xf32, #tpu.memory_space<vmem>>, %arg13: memref<128x128xbf16, #tpu.memory_space<vmem>>, %arg14: memref<1x128xf32, #tpu.memory_space<vmem>>, %arg15: memref<128x128xbf16, #tpu.memory_space<vmem>>, %arg16: memref<1x128xf32, #tpu.memory_space<vmem>>, %arg17: memref<128x128xbf16, #tpu.memory_space<vmem>>, %arg18: memref<1x128xf32, #tpu.memory_space<vmem>>, %arg19: memref<128x128xbf16, #tpu.memory_space<vmem>>, %arg20: memref<1x128xf32, #tpu.memory_space<vmem>>, %arg21: memref<128x128xf32, #tpu.memory_space<vmem>>) attributes {dimension_semantics = [#tpu.dimension_semantics<parallel>], iteration_bounds = array<i64: 2>, scalar_prefetch = 0 : i64, scratch_operands = 0 : i64, tpu.core_type = #tpu.core_type<tc>, window_params = [{transform_indices = @transform_0, window_bounds = array<i64: 128, 64>}, {pipeline_mode = #tpu.pipeline_mode<synchronous>, transform_indices = @transform_1, window_bounds = array<i64: 64, 128>}, {pipeline_mode = #tpu.pipeline_mode<synchronous>, transform_indices = @transform_2, window_bounds = array<i64: 1, 128>}, {pipeline_mode = #tpu.pipeline_mode<synchronous>, transform_indices = @transform_3, window_bounds = array<i64: 128, 128>}, {pipeline_mode = #tpu.pipeline_mode<synchronous>, transform_indices = @transform_4, window_bounds = array<i64: 1, 128>}, {pipeline_mode = #tpu.pipeline_mode<synchronous>, transform_indices = @transform_5, window_bounds = array<i64: 128, 128>}, {pipeline_mode = #tpu.pipeline_mode<synchronous>, transform_indices = @transform_6, window_bounds = array<i64: 1, 128>}, {pipeline_mode = #tpu.pipeline_mode<synchronous>, transform_indices = @transform_7, window_bounds = array<i64: 128, 128>}, {pipeline_mode = #tpu.pipeline_mode<synchronous>, transform_indices = @transform_8, window_bounds = array<i64: 1, 128>}, {pipeline_mode = #tpu.pipeline_mode<synchronous>, transform_indices = @transform_9, window_bounds = array<i64: 128, 128>}, {pipeline_mode = #tpu.pipeline_mode<synchronous>, transform_indices = @transform_10, window_bounds = array<i64: 64, 128>}, {pipeline_mode = #tpu.pipeline_mode<synchronous>, transform_indices = @transform_11, window_bounds = array<i64: 1, 128>}, {pipeline_mode = #tpu.pipeline_mode<synchronous>, transform_indices = @transform_12, window_bounds = array<i64: 128, 128>}, {pipeline_mode = #tpu.pipeline_mode<synchronous>, transform_indices = @transform_13, window_bounds = array<i64: 1, 128>}, {pipeline_mode = #tpu.pipeline_mode<synchronous>, transform_indices = @transform_14, window_bounds = array<i64: 128, 128>}, {pipeline_mode = #tpu.pipeline_mode<synchronous>, transform_indices = @transform_15, window_bounds = array<i64: 1, 128>}, {pipeline_mode = #tpu.pipeline_mode<synchronous>, transform_indices = @transform_16, window_bounds = array<i64: 128, 128>}, {pipeline_mode = #tpu.pipeline_mode<synchronous>, transform_indices = @transform_17, window_bounds = array<i64: 1, 128>}, {pipeline_mode = #tpu.pipeline_mode<synchronous>, transform_indices = @transform_18, window_bounds = array<i64: 128, 128>}, {pipeline_mode = #tpu.pipeline_mode<synchronous>, transform_indices = @transform_19, window_bounds = array<i64: 1, 128>}, {transform_indices = @transform_20, window_bounds = array<i64: 128, 128>}]} {
    %c0 = arith.constant 0 : index
    %c0_0 = arith.constant 0 : index
    %0 = vector.load %arg1[%c0, %c0_0] : memref<128x64xf32, #tpu.memory_space<vmem>>, vector<128x64xf32>
    %1 = arith.truncf %0 : vector<128x64xf32> to vector<128x64xbf16>
    %c0_1 = arith.constant 0 : index
    %c0_2 = arith.constant 0 : index
    %2 = vector.load %arg2[%c0_1, %c0_2] : memref<64x128xbf16, #tpu.memory_space<vmem>>, vector<64x128xbf16>
    %c0_3 = arith.constant 0 : index
    %c0_4 = arith.constant 0 : index
    %3 = vector.load %arg3[%c0_3, %c0_4] : memref<1x128xf32, #tpu.memory_space<vmem>>, vector<1x128xf32>
    %cst = arith.constant dense<0.000000e+00> : vector<128x128xf32>
    %4 = tpu.matmul %1, %2, %cst {dimension_numbers = #tpu.dot_dimension_numbers<[1], [0], [0], [1], [0, 0, 1, 1], [], []>} : vector<128x64xbf16>, vector<64x128xbf16>, vector<128x128xf32> -> vector<128x128xf32>
    %5 = vector.broadcast %3 : vector<1x128xf32> to vector<128x128xf32>
    %6 = arith.addf %4, %5 : vector<128x128xf32>
    %cst_5 = arith.constant 0.000000e+00 : f32
    %7 = vector.broadcast %cst_5 : f32 to vector<128x128xf32>
    %8 = arith.maximumf %6, %7 : vector<128x128xf32>
    %9 = arith.truncf %8 : vector<128x128xf32> to vector<128x128xbf16>
    %c0_6 = arith.constant 0 : index
    %c0_7 = arith.constant 0 : index
    %10 = vector.load %arg4[%c0_6, %c0_7] : memref<128x128xbf16, #tpu.memory_space<vmem>>, vector<128x128xbf16>
    %c0_8 = arith.constant 0 : index
    %c0_9 = arith.constant 0 : index
    %11 = vector.load %arg5[%c0_8, %c0_9] : memref<1x128xf32, #tpu.memory_space<vmem>>, vector<1x128xf32>
    %cst_10 = arith.constant dense<0.000000e+00> : vector<128x128xf32>
    %12 = tpu.matmul %9, %10, %cst_10 {dimension_numbers = #tpu.dot_dimension_numbers<[1], [0], [0], [1], [0, 0, 1, 1], [], []>} : vector<128x128xbf16>, vector<128x128xbf16>, vector<128x128xf32> -> vector<128x128xf32>
    %13 = vector.broadcast %11 : vector<1x128xf32> to vector<128x128xf32>
    %14 = arith.addf %12, %13 : vector<128x128xf32>
    %cst_11 = arith.constant 0.000000e+00 : f32
    %15 = vector.broadcast %cst_11 : f32 to vector<128x128xf32>
    %16 = arith.maximumf %14, %15 : vector<128x128xf32>
    %17 = arith.truncf %16 : vector<128x128xf32> to vector<128x128xbf16>
    %c0_12 = arith.constant 0 : index
    %c0_13 = arith.constant 0 : index
    %18 = vector.load %arg6[%c0_12, %c0_13] : memref<128x128xbf16, #tpu.memory_space<vmem>>, vector<128x128xbf16>
    %c0_14 = arith.constant 0 : index
    %c0_15 = arith.constant 0 : index
    %19 = vector.load %arg7[%c0_14, %c0_15] : memref<1x128xf32, #tpu.memory_space<vmem>>, vector<1x128xf32>
    %cst_16 = arith.constant dense<0.000000e+00> : vector<128x128xf32>
    %20 = tpu.matmul %17, %18, %cst_16 {dimension_numbers = #tpu.dot_dimension_numbers<[1], [0], [0], [1], [0, 0, 1, 1], [], []>} : vector<128x128xbf16>, vector<128x128xbf16>, vector<128x128xf32> -> vector<128x128xf32>
    %21 = vector.broadcast %19 : vector<1x128xf32> to vector<128x128xf32>
    %22 = arith.addf %20, %21 : vector<128x128xf32>
    %cst_17 = arith.constant 0.000000e+00 : f32
    %23 = vector.broadcast %cst_17 : f32 to vector<128x128xf32>
    %24 = arith.maximumf %22, %23 : vector<128x128xf32>
    %25 = arith.truncf %24 : vector<128x128xf32> to vector<128x128xbf16>
    %c0_18 = arith.constant 0 : index
    %c0_19 = arith.constant 0 : index
    %26 = vector.load %arg8[%c0_18, %c0_19] : memref<128x128xbf16, #tpu.memory_space<vmem>>, vector<128x128xbf16>
    %c0_20 = arith.constant 0 : index
    %c0_21 = arith.constant 0 : index
    %27 = vector.load %arg9[%c0_20, %c0_21] : memref<1x128xf32, #tpu.memory_space<vmem>>, vector<1x128xf32>
    %cst_22 = arith.constant dense<0.000000e+00> : vector<128x128xf32>
    %28 = tpu.matmul %25, %26, %cst_22 {dimension_numbers = #tpu.dot_dimension_numbers<[1], [0], [0], [1], [0, 0, 1, 1], [], []>} : vector<128x128xbf16>, vector<128x128xbf16>, vector<128x128xf32> -> vector<128x128xf32>
    %29 = vector.broadcast %27 : vector<1x128xf32> to vector<128x128xf32>
    %30 = arith.addf %28, %29 : vector<128x128xf32>
    %cst_23 = arith.constant 0.000000e+00 : f32
    %31 = vector.broadcast %cst_23 : f32 to vector<128x128xf32>
    %32 = arith.maximumf %30, %31 : vector<128x128xf32>
    %33 = arith.truncf %32 : vector<128x128xf32> to vector<128x128xbf16>
    %c0_24 = arith.constant 0 : index
    %c0_25 = arith.constant 0 : index
    %34 = vector.load %arg10[%c0_24, %c0_25] : memref<128x128xbf16, #tpu.memory_space<vmem>>, vector<128x128xbf16>
    %c0_26 = arith.constant 0 : index
    %c0_27 = arith.constant 0 : index
    %35 = vector.load %arg11[%c0_26, %c0_27] : memref<64x128xbf16, #tpu.memory_space<vmem>>, vector<64x128xbf16>
    %c0_28 = arith.constant 0 : index
    %c0_29 = arith.constant 0 : index
    %36 = vector.load %arg12[%c0_28, %c0_29] : memref<1x128xf32, #tpu.memory_space<vmem>>, vector<1x128xf32>
    %cst_30 = arith.constant dense<0.000000e+00> : vector<128x128xf32>
    %37 = tpu.matmul %33, %34, %cst_30 {dimension_numbers = #tpu.dot_dimension_numbers<[1], [0], [0], [1], [0, 0, 1, 1], [], []>} : vector<128x128xbf16>, vector<128x128xbf16>, vector<128x128xf32> -> vector<128x128xf32>
    %cst_31 = arith.constant dense<0.000000e+00> : vector<128x128xf32>
    %38 = tpu.matmul %1, %35, %cst_31 {dimension_numbers = #tpu.dot_dimension_numbers<[1], [0], [0], [1], [0, 0, 1, 1], [], []>} : vector<128x64xbf16>, vector<64x128xbf16>, vector<128x128xf32> -> vector<128x128xf32>
    %39 = arith.addf %37, %38 : vector<128x128xf32>
    %40 = vector.broadcast %36 : vector<1x128xf32> to vector<128x128xf32>
    %41 = arith.addf %39, %40 : vector<128x128xf32>
    %cst_32 = arith.constant 0.000000e+00 : f32
    %42 = vector.broadcast %cst_32 : f32 to vector<128x128xf32>
    %43 = arith.maximumf %41, %42 : vector<128x128xf32>
    %44 = arith.truncf %43 : vector<128x128xf32> to vector<128x128xbf16>
    %c0_33 = arith.constant 0 : index
    %c0_34 = arith.constant 0 : index
    %45 = vector.load %arg13[%c0_33, %c0_34] : memref<128x128xbf16, #tpu.memory_space<vmem>>, vector<128x128xbf16>
    %c0_35 = arith.constant 0 : index
    %c0_36 = arith.constant 0 : index
    %46 = vector.load %arg14[%c0_35, %c0_36] : memref<1x128xf32, #tpu.memory_space<vmem>>, vector<1x128xf32>
    %cst_37 = arith.constant dense<0.000000e+00> : vector<128x128xf32>
    %47 = tpu.matmul %44, %45, %cst_37 {dimension_numbers = #tpu.dot_dimension_numbers<[1], [0], [0], [1], [0, 0, 1, 1], [], []>} : vector<128x128xbf16>, vector<128x128xbf16>, vector<128x128xf32> -> vector<128x128xf32>
    %48 = vector.broadcast %46 : vector<1x128xf32> to vector<128x128xf32>
    %49 = arith.addf %47, %48 : vector<128x128xf32>
    %cst_38 = arith.constant 0.000000e+00 : f32
    %50 = vector.broadcast %cst_38 : f32 to vector<128x128xf32>
    %51 = arith.maximumf %49, %50 : vector<128x128xf32>
    %52 = arith.truncf %51 : vector<128x128xf32> to vector<128x128xbf16>
    %c0_39 = arith.constant 0 : index
    %c0_40 = arith.constant 0 : index
    %53 = vector.load %arg15[%c0_39, %c0_40] : memref<128x128xbf16, #tpu.memory_space<vmem>>, vector<128x128xbf16>
    %c0_41 = arith.constant 0 : index
    %c0_42 = arith.constant 0 : index
    %54 = vector.load %arg16[%c0_41, %c0_42] : memref<1x128xf32, #tpu.memory_space<vmem>>, vector<1x128xf32>
    %cst_43 = arith.constant dense<0.000000e+00> : vector<128x128xf32>
    %55 = tpu.matmul %52, %53, %cst_43 {dimension_numbers = #tpu.dot_dimension_numbers<[1], [0], [0], [1], [0, 0, 1, 1], [], []>} : vector<128x128xbf16>, vector<128x128xbf16>, vector<128x128xf32> -> vector<128x128xf32>
    %56 = vector.broadcast %54 : vector<1x128xf32> to vector<128x128xf32>
    %57 = arith.addf %55, %56 : vector<128x128xf32>
    %cst_44 = arith.constant 0.000000e+00 : f32
    %58 = vector.broadcast %cst_44 : f32 to vector<128x128xf32>
    %59 = arith.maximumf %57, %58 : vector<128x128xf32>
    %60 = arith.truncf %59 : vector<128x128xf32> to vector<128x128xbf16>
    %c0_45 = arith.constant 0 : index
    %c0_46 = arith.constant 0 : index
    %61 = vector.load %arg17[%c0_45, %c0_46] : memref<128x128xbf16, #tpu.memory_space<vmem>>, vector<128x128xbf16>
    %c0_47 = arith.constant 0 : index
    %c0_48 = arith.constant 0 : index
    %62 = vector.load %arg18[%c0_47, %c0_48] : memref<1x128xf32, #tpu.memory_space<vmem>>, vector<1x128xf32>
    %cst_49 = arith.constant dense<0.000000e+00> : vector<128x128xf32>
    %63 = tpu.matmul %60, %61, %cst_49 {dimension_numbers = #tpu.dot_dimension_numbers<[1], [0], [0], [1], [0, 0, 1, 1], [], []>} : vector<128x128xbf16>, vector<128x128xbf16>, vector<128x128xf32> -> vector<128x128xf32>
    %64 = vector.broadcast %62 : vector<1x128xf32> to vector<128x128xf32>
    %65 = arith.addf %63, %64 : vector<128x128xf32>
    %cst_50 = arith.constant 0.000000e+00 : f32
    %66 = vector.broadcast %cst_50 : f32 to vector<128x128xf32>
    %67 = arith.maximumf %65, %66 : vector<128x128xf32>
    %68 = arith.truncf %67 : vector<128x128xf32> to vector<128x128xbf16>
    %c0_51 = arith.constant 0 : index
    %c0_52 = arith.constant 0 : index
    %69 = vector.load %arg19[%c0_51, %c0_52] : memref<128x128xbf16, #tpu.memory_space<vmem>>, vector<128x128xbf16>
    %c0_53 = arith.constant 0 : index
    %c0_54 = arith.constant 0 : index
    %70 = vector.load %arg20[%c0_53, %c0_54] : memref<1x128xf32, #tpu.memory_space<vmem>>, vector<1x128xf32>
    %cst_55 = arith.constant dense<0.000000e+00> : vector<128x128xf32>
    %71 = tpu.matmul %68, %69, %cst_55 {dimension_numbers = #tpu.dot_dimension_numbers<[1], [0], [0], [1], [0, 0, 1, 1], [], []>} : vector<128x128xbf16>, vector<128x128xbf16>, vector<128x128xf32> -> vector<128x128xf32>
    %72 = vector.broadcast %70 : vector<1x128xf32> to vector<128x128xf32>
    %73 = arith.addf %71, %72 : vector<128x128xf32>
    %cst_56 = arith.constant dense<0xFF800000> : vector<128xf32>
    %74 = vector.multi_reduction <maximumf>, %73, %cst_56 [1] : vector<128x128xf32> to vector<128xf32>
    %75 = vector.shape_cast %74 : vector<128xf32> to vector<128x1xf32>
    %76 = vector.broadcast %75 : vector<128x1xf32> to vector<128x128xf32>
    %77 = arith.subf %73, %76 : vector<128x128xf32>
    %78 = math.exp %77 : vector<128x128xf32>
    %cst_57 = arith.constant dense<0.000000e+00> : vector<128xf32>
    %79 = vector.multi_reduction <add>, %78, %cst_57 [1] : vector<128x128xf32> to vector<128xf32>
    %80 = vector.shape_cast %79 : vector<128xf32> to vector<128x1xf32>
    %81 = tpu.reciprocal %80 {approx = true} : vector<128x1xf32> -> vector<128x1xf32>
    %82 = vector.broadcast %81 : vector<128x1xf32> to vector<128x128xf32>
    %83 = arith.mulf %78, %82 : vector<128x128xf32>
    %c0_58 = arith.constant 0 : index
    %c0_59 = arith.constant 0 : index
    %84 = vector.load %arg21[%c0_58, %c0_59] : memref<128x128xf32, #tpu.memory_space<vmem>>, vector<128x128xf32>
    tpu.vector_store %arg21[%c0_58, %c0_59], %83 {strides = array<i32>} : memref<128x128xf32, #tpu.memory_space<vmem>>, vector<128x128xf32>,
    return
  }
  func.func @transform_0(%arg0: i32) -> (i32, i32) {
    %c0_i32 = arith.constant 0 : i32
    %c0_i32_0 = arith.constant 0 : i32
    return %arg0, %c0_i32 : i32, i32
  }
  func.func @transform_1(%arg0: i32) -> (i32, i32) {
    %c0_i32 = arith.constant 0 : i32
    %c0_i32_0 = arith.constant 0 : i32
    %c0_i32_1 = arith.constant 0 : i32
    return %c0_i32, %c0_i32_0 : i32, i32
  }
  func.func @transform_2(%arg0: i32) -> (i32, i32) {
    %c0_i32 = arith.constant 0 : i32
    %c0_i32_0 = arith.constant 0 : i32
    %c0_i32_1 = arith.constant 0 : i32
    return %c0_i32, %c0_i32_0 : i32, i32
  }
  func.func @transform_3(%arg0: i32) -> (i32, i32) {
    %c0_i32 = arith.constant 0 : i32
    %c0_i32_0 = arith.constant 0 : i32
    %c0_i32_1 = arith.constant 0 : i32
    return %c0_i32, %c0_i32_0 : i32, i32
  }
  func.func @transform_4(%arg0: i32) -> (i32, i32) {
    %c0_i32 = arith.constant 0 : i32
    %c0_i32_0 = arith.constant 0 : i32
    %c0_i32_1 = arith.constant 0 : i32
    return %c0_i32, %c0_i32_0 : i32, i32
  }
  func.func @transform_5(%arg0: i32) -> (i32, i32) {
    %c0_i32 = arith.constant 0 : i32
    %c0_i32_0 = arith.constant 0 : i32
    %c0_i32_1 = arith.constant 0 : i32
    return %c0_i32, %c0_i32_0 : i32, i32
  }
  func.func @transform_6(%arg0: i32) -> (i32, i32) {
    %c0_i32 = arith.constant 0 : i32
    %c0_i32_0 = arith.constant 0 : i32
    %c0_i32_1 = arith.constant 0 : i32
    return %c0_i32, %c0_i32_0 : i32, i32
  }
  func.func @transform_7(%arg0: i32) -> (i32, i32) {
    %c0_i32 = arith.constant 0 : i32
    %c0_i32_0 = arith.constant 0 : i32
    %c0_i32_1 = arith.constant 0 : i32
    return %c0_i32, %c0_i32_0 : i32, i32
  }
  func.func @transform_8(%arg0: i32) -> (i32, i32) {
    %c0_i32 = arith.constant 0 : i32
    %c0_i32_0 = arith.constant 0 : i32
    %c0_i32_1 = arith.constant 0 : i32
    return %c0_i32, %c0_i32_0 : i32, i32
  }
  func.func @transform_9(%arg0: i32) -> (i32, i32) {
    %c0_i32 = arith.constant 0 : i32
    %c0_i32_0 = arith.constant 0 : i32
    %c0_i32_1 = arith.constant 0 : i32
    return %c0_i32, %c0_i32_0 : i32, i32
  }
  func.func @transform_10(%arg0: i32) -> (i32, i32) {
    %c0_i32 = arith.constant 0 : i32
    %c0_i32_0 = arith.constant 0 : i32
    %c0_i32_1 = arith.constant 0 : i32
    return %c0_i32, %c0_i32_0 : i32, i32
  }
  func.func @transform_11(%arg0: i32) -> (i32, i32) {
    %c0_i32 = arith.constant 0 : i32
    %c0_i32_0 = arith.constant 0 : i32
    %c0_i32_1 = arith.constant 0 : i32
    return %c0_i32, %c0_i32_0 : i32, i32
  }
  func.func @transform_12(%arg0: i32) -> (i32, i32) {
    %c0_i32 = arith.constant 0 : i32
    %c0_i32_0 = arith.constant 0 : i32
    %c0_i32_1 = arith.constant 0 : i32
    return %c0_i32, %c0_i32_0 : i32, i32
  }
  func.func @transform_13(%arg0: i32) -> (i32, i32) {
    %c0_i32 = arith.constant 0 : i32
    %c0_i32_0 = arith.constant 0 : i32
    %c0_i32_1 = arith.constant 0 : i32
    return %c0_i32, %c0_i32_0 : i32, i32
  }
  func.func @transform_14(%arg0: i32) -> (i32, i32) {
    %c0_i32 = arith.constant 0 : i32
    %c0_i32_0 = arith.constant 0 : i32
    %c0_i32_1 = arith.constant 0 : i32
    return %c0_i32, %c0_i32_0 : i32, i32
  }
  func.func @transform_15(%arg0: i32) -> (i32, i32) {
    %c0_i32 = arith.constant 0 : i32
    %c0_i32_0 = arith.constant 0 : i32
    %c0_i32_1 = arith.constant 0 : i32
    return %c0_i32, %c0_i32_0 : i32, i32
  }
  func.func @transform_16(%arg0: i32) -> (i32, i32) {
    %c0_i32 = arith.constant 0 : i32
    %c0_i32_0 = arith.constant 0 : i32
    %c0_i32_1 = arith.constant 0 : i32
    return %c0_i32, %c0_i32_0 : i32, i32
  }
  func.func @transform_17(%arg0: i32) -> (i32, i32) {
    %c0_i32 = arith.constant 0 : i32
    %c0_i32_0 = arith.constant 0 : i32
    %c0_i32_1 = arith.constant 0 : i32
    return %c0_i32, %c0_i32_0 : i32, i32
  }
  func.func @transform_18(%arg0: i32) -> (i32, i32) {
    %c0_i32 = arith.constant 0 : i32
    %c0_i32_0 = arith.constant 0 : i32
    %c0_i32_1 = arith.constant 0 : i32
    return %c0_i32, %c0_i32_0 : i32, i32
  }
  func.func @transform_19(%arg0: i32) -> (i32, i32) {
    %c0_i32 = arith.constant 0 : i32
    %c0_i32_0 = arith.constant 0 : i32
    %c0_i32_1 = arith.constant 0 : i32
    return %c0_i32, %c0_i32_0 : i32, i32
  }
  func.func @transform_20(%arg0: i32) -> (i32, i32) {
    %c0_i32 = arith.constant 0 : i32
    %c0_i32_0 = arith.constant 0 : i32
    return %arg0, %c0_i32 : i32, i32
  }
}

</mosaic_0001>

<bundles_post_ra>
// kernel: tpu_custom_call.1
= control target key start
LH: loop header
LB: loop body
LE: loop exit
PB: predicated region body
PF: predicated region fallthrough
CT: control target
= control target key end

     0   :  { %s4575_s0 = inlined_call_operand.vmem [shape: f32[256,64], index: 0, kind: input, shape index: {}]   ;;  %s4576_s1 = inlined_call_operand.hbm [shape: bf16[64,128], index: 1, kind: input, shape index: {}]   ;;  %s4577_s2 = inlined_call_operand.hbm [shape: f32[1,128], index: 2, kind: input, shape index: {}]   ;;  %s4578_s3 = inlined_call_operand.vmem [shape: bf16[128,128], index: 3, kind: input, shape index: {}]   ;;  %s4579_s4 = inlined_call_operand.vmem [shape: f32[1,128], index: 4, kind: input, shape index: {}]   ;;  %s4580_s5 = inlined_call_operand.vmem [shape: bf16[128,128], index: 5, kind: input, shape index: {}]   ;;  %s4581_s6 = inlined_call_operand.vmem [shape: f32[1,128], index: 6, kind: input, shape index: {}]   ;;  %s4582_s7 = inlined_call_operand.vmem [shape: bf16[128,128], index: 7, kind: input, shape index: {}]   ;;  %s4583_s8 = inlined_call_operand.vmem [shape: f32[1,128], index: 8, kind: input, shape index: {}]   ;;  %s4584_s9 = inlined_call_operand.vmem [shape: bf16[128,128], index: 9, kind: input, shape index: {}]   ;;  %s4585_s10 = inlined_call_operand.hbm [shape: bf16[64,128], index: 10, kind: input, shape index: {}]   ;;  %s4586_s11 = inlined_call_operand.vmem [shape: f32[1,128], index: 11, kind: input, shape index: {}]   ;;  %s4587_s12 = inlined_call_operand.vmem [shape: bf16[128,128], index: 12, kind: input, shape index: {}]   ;;  %s4588_s13 = inlined_call_operand.vmem [shape: f32[1,128], index: 13, kind: input, shape index: {}]   ;;  %s4589_s14 = inlined_call_operand.vmem [shape: bf16[128,128], index: 14, kind: input, shape index: {}]   ;;  %s4590_s15 = inlined_call_operand.vmem [shape: f32[1,128], index: 15, kind: input, shape index: {}]   ;;  %s4591_s16 = inlined_call_operand.hbm [shape: bf16[128,128], index: 16, kind: input, shape index: {}]   ;;  %s4592_s17 = inlined_call_operand.vmem [shape: f32[1,128], index: 17, kind: input, shape index: {}]   ;;  %s4593_s18 = inlined_call_operand.hbm [shape: bf16[128,128], index: 18, kind: input, shape index: {}]   ;;  %s4594_s19 = inlined_call_operand.vmem [shape: f32[1,128], index: 19, kind: input, shape index: {}]   ;;  %s4595_s20 = inlined_call_operand.hbm [shape: f32[256,128], index: 20, kind: output, shape index: {}]  }
   0x1   :  { %4607 = sst [smem:[#allocation23_spill]] %s4575_s0 }
   0x2   :  { %4608 = sst [smem:[#allocation24_spill]] %s4576_s1 }
   0x3   :  { %4609 = sst [smem:[#allocation25_spill]] %s4577_s2 }
   0x4   :  { %4610 = sst [smem:[#allocation26_spill]] %s4578_s3 }
   0x5   :  { %4611 = sst [smem:[#allocation27_spill]] %s4579_s4 }
   0x6   :  { %4612 = sst [smem:[#allocation28_spill]] %s4591_s16 }
   0x7   :  { %4613 = sst [smem:[#allocation29_spill]] %s4595_s20 }
   0x8   :  { %25 = vsyncpa [#allocation3], 0 }
   0x9   :  { %26 = vsyncpa [#allocation6], 0 }
   0xa   :  { %27 = vsyncpa [#allocation9], 0 }
   0xb   :  { %28 = vsyncpa [#allocation4], 0 }
   0xc   :  { %30 = vsyncpa [#allocation4 + $0x1], 0  ;;  %s3996_s1 = smov 0   ;;  %s3998_s22 = smov 0  }
   0xd   :  { %s4000_s23 = smov 0   ;;  %s4002_s24 = smov 0  }
   0xe LB: > { %4614 = sst [smem:[#allocation16_spill]] %s3867_s1  ;;  %s4017_s2 = sadd.s32 4294967295, %s3879_s24   ;;  %s3879_s24 = sphi %s4002_s24, %s4643_s24   ;;  %s3875_s23 = sphi %s4000_s23, %s4645_s23   ;;  %s3871_s22 = sphi %s3998_s22, %s4647_s22   ;;  %s3867_s1 = sphi %s3996_s1, %s4646_s1  }
   0xf   : > { %4615 = sst [smem:[#allocation17_spill]] %s3875_s23  ;;  %s2855_s25 = sadd.s32 4294967294, %s3879_s24  }
  0x10   : > { %4616 = sst [smem:[#allocation18_spill]] %s3879_s24  ;;  %s4021_s3 = sadd.s32 1, %s3879_s24  }
  0x11   : > { %4617 = sst [smem:[#allocation19_spill]] %s4021_s3  ;;  %s468_s26 = sadd.s32 1, %s3875_s23 }
  0x12   : > { %s465_s27 = ssub.s32 %s3879_s24, %s4021_s3  ;;  %p478_p0 = scmp.ne.s32.totalorder %s3875_s23, %s3871_s22 }
  0x13   : > { %p466_p1 = scmp.eq.s32.totalorder %s465_s27, 0  ;;  %p479_p2 = scmp.eq.s32.totalorder %s4017_s2, 1 }
  0x14   : > { %p484_p3 = scmp.ne.s32.totalorder %s3871_s22, %s3867_s1  ;;  %p485_p4 = scmp.eq.s32.totalorder %s2855_s25, 1 }
  0x15   : > { %s4032_s28 = scalar_select %p466_p1, %s3875_s23, %s468_s26  }
  0x16   : > { %p4034_p5 = por %p479_p2, %p478_p0  ;;  %p4038_p6 = por %p485_p4, %p484_p3 }
  0x17   : > { %4618 = sst [smem:[#allocation20_spill]] %s4032_s28  ;;  %p2856_p7 = scmp.ge.s32.totalorder %s3879_s24, 1 }
  0x18   : > { %s4619_s4 = scalar_select %p4034_p5, 1, 0 }
  0x19   : > { %s4621_s29 = scalar_select %p4038_p6, 1, 0 }
  0x1a   : > { %4620 = sst [smem:[#allocation21_spill]] %s4619_s4  ;;  %p492_p8 = scmp.lt.s32.totalorder %s3879_s24, 3 }
  0x1b   : > { %4622 = sst [smem:[#allocation22_spill]] %s4621_s29  ;;  %p4603_p9 = scmp.eq.s32.totalorder %s4017_s2, 0 }
  0x1c   : > { %p4045_p10 = pnand %p2856_p7, %p492_p8  ;;  %s3881_s0 = smov [#allocation5]  }
  0x1d   : > { %s518_s21 = sshll.u32 %s3881_s0, 4  ;;  %s3882_s26 = smov [#allocation8]   ;;  %s519_s21 = int_to_ptr.vmem [resolvable:$true] %s518_s21 }
  0x1e   : > { %p3469_p11 = pneg %p4045_p10  ;;  %s577_s27 = sshll.u32 %s3882_s26, 4  ;;  %s4057_s27 = int_to_ptr.vmem [resolvable:$true] %s577_s27 }
  0x1f   : > { %s3883_s28 = smov [#allocation2]   ;;  %s3688_s0 = scalar_lea.vmem %s519_s21, 16 }
  0x20   : > { %p4053_p12 = pnand %p4603_p9, %p3469_p11  ;;  %s504_s23 = sshll.u32 %s3883_s28, 4  ;;  %s505_s23 = int_to_ptr.vmem [resolvable:$true] %s504_s23 }
  0x21   : > { %p3689_p0 = scmp.ne.s32.totalorder %s519_s21, %s3688_s0  ;;  %s3695_s29 = scalar_lea.vmem %s519_s21, 32 }
  0x22   : > { %p4061_p13 = pneg %p4053_p12  ;;  %p3696_p3 = scmp.lt.s32.totalorder %s519_s21, %s519_s21 }
  0x23   : > { %p3697_p4 = scmp.lt.s32.totalorder %s3695_s29, %s3688_s0 }
  0x24   : > { %p3691_p1 = pnand %p3689_p0, %p4061_p13 }
  0x25   : > { %p3698_p7 = por %p3697_p4, %p3696_p3 }
  0x26   : > { %p3692_p2 = pneg %p3691_p1 }
  0x28   : > { %p3699_p8 = pnand %p3698_p7, %p3692_p2 }
  0x2a   : > { %3702 = shalt.err (!%p3699_p8)
}
  0x2b   : > { %s4626_s1 = sld [smem:[#allocation25_spill]]  ;;  %s3714_s24 = scalar_lea.vmem %s4057_s27, 1024 }
  0x2c   : > { %p3715_p11 = scmp.ne.s32.totalorder %s4057_s27, %s3714_s24  ;;  %p3722_p9 = scmp.lt.s32.totalorder %s4057_s27, %s4057_s27 }
  0x2d   : > { %p3723_p3 = scmp.lt.s32.totalorder %s3714_s24, %s3714_s24 }
  0x2e   : > { %p3717_p0 = pnand %p3715_p11, %p4061_p13 }
  0x2f   : > { %p3724_p2 = por %p3723_p3, %p3722_p9 }
  0x30   : > { %p3718_p1 = pneg %p3717_p0 }
  0x31   : > { %3475 = dma.hbm_to_vmem [thread:$0]  (!%p4053_p12), %s4626_s1, 16, %s519_s21, [#allocation6]  }
  0x32   : > { %p3725_p4 = pnand %p3724_p2, %p3718_p1 }
  0x34   : > { %3728 = shalt.err (!%p3725_p4)
}
  0x35   : > { %s3884_s29 = smov 64   ;;  %s3885_s0 = smov 4  }
  0x36   : > { %s4627_s16 = sld [smem:[#allocation28_spill]]  ;;  %s3740_s28 = scalar_lea.vmem %s505_s23, 512 }
  0x37   : > { %p3741_p7 = scmp.ne.s32.totalorder %s505_s23, %s3740_s28  ;;  %p3748_p11 = scmp.lt.s32.totalorder %s505_s23, %s505_s23 }
  0x38   : > { %p3749_p0 = scmp.lt.s32.totalorder %s3740_s28, %s3740_s28 }
  0x39   : > { %p3743_p9 = pnand %p3741_p7, %p4061_p13 }
  0x3a   : > { %p3750_p1 = por %p3749_p0, %p3748_p11 }
  0x3b   : > { %p3744_p8 = pneg %p3743_p9 }
  0x3c   : > { %3481 = dma.hbm_to_vmem [thread:$0]  (!%p4053_p12), %s4627_s16, 1024, %s4057_s27, [#allocation9], %s3884_s29, %s3884_s29, %s3885_s0  }
  0x3d   : > { %p3751_p3 = pnand %p3750_p1, %p3744_p8 }
  0x3f   : > { %3754 = shalt.err (!%p3751_p3)
}
  0x40   : > { %s4628_s1 = sld [smem:[#allocation24_spill]]  ;;  %s3886_s27 = smov [#allocation7]  }
  0x41   : > { %s549_s21 = sshll.u32 %s3886_s27, 4  ;;  %s3887_s16 = smov [#allocation10]   ;;  %s550_s21 = int_to_ptr.vmem [resolvable:$true] %s549_s21 }
  0x42   : > { %s593_s20 = sshll.u32 %s3887_s16, 4  ;;  %s3766_s4 = scalar_lea.vmem %s550_s21, 512  ;;  %s594_s20 = int_to_ptr.vmem [resolvable:$true] %s593_s20 }
  0x43   : > { %p3767_p2 = scmp.ne.s32.totalorder %s550_s21, %s3766_s4  ;;  %p3774_p9 = scmp.lt.s32.totalorder %s550_s21, %s550_s21 }
  0x44   : > { %p3775_p8 = scmp.lt.s32.totalorder %s3766_s4, %s3766_s4 }
  0x45   : > { %p3769_p4 = pnand %p3767_p2, %p4061_p13 }
  0x46   : > { %3472 = dma.hbm_to_vmem [thread:$0]  (!%p4053_p12), %s4628_s1, 512, %s505_s23, [#allocation3], %s3884_s29, %s3884_s29, %s3885_s0  }
  0x47   : > { %p3770_p7 = pneg %p3769_p4  ;;  %p3776_p11 = por %p3775_p8, %p3774_p9 }
  0x49   : > { %p3777_p0 = pnand %p3776_p11, %p3770_p7 }
  0x4b   : > { %3780 = shalt.err (!%p3777_p0)
}
  0x4c   : > { %3478 = dma.hbm_to_vmem [thread:$0]  (!%p4053_p12), %s4585_s10, 512, %s550_s21, [#allocation6], %s3884_s29, %s3884_s29, %s3885_s0  }
  0x4d   : > { %s3792_s16 = scalar_lea.vmem %s594_s20, 1024  ;;  %p3800_p4 = scmp.lt.s32.totalorder %s594_s20, %s594_s20 }
  0x4e   : > { %p3793_p1 = scmp.ne.s32.totalorder %s594_s20, %s3792_s16  ;;  %p3801_p9 = scmp.lt.s32.totalorder %s3792_s16, %s3792_s16 }
  0x50   : > { %p3795_p3 = pnand %p3793_p1, %p4061_p13  ;;  %p3802_p7 = por %p3801_p9, %p3800_p4 }
  0x52   : > { %p3796_p2 = pneg %p3795_p3 }
  0x54   : > { %p3803_p8 = pnand %p3802_p7, %p3796_p2 }
  0x56   : > { %3806 = shalt.err (!%p3803_p8)
}
  0x57   : > { %3484 = dma.hbm_to_vmem [thread:$0]  (!%p4053_p12), %s4593_s18, 1024, %s594_s20, [#allocation9], %s3884_s29, %s3884_s29, %s3885_s0  }
  0x58   : > { %621 = sbr.rel (%p4045_p10) target bundleno = 2321 (0x911), region = 100  ;;  %p4629_p13 = scmp.eq.s32.totalorder (!%p4045_p10), %s4017_s2, 0 }
  0x5d   : > { %3850 = dma.done.wait (%p4629_p13), [#allocation3], 512   ;;  %p4630_p11 = pmov %p4629_p13 }
  0x5f   : > { %3852 = vsyncadd (%p4630_p11), [#allocation3], 4294966784  ;;  %p4631_p0 = pmov %p4630_p11 }
  0x61   : > { %3854 = dma.done.wait (%p4631_p0), [#allocation6], 528   ;;  %p4632_p1 = pmov %p4631_p0 }
  0x62   : > { %p4633_p3 = pmov %p4631_p0 }
  0x63   : > { %3856 = vsyncadd (%p4632_p1), [#allocation6], 4294966768 }
  0x64   : > { %3858 = dma.done.wait (%p4633_p3), [#allocation9], 2048   ;;  %p4634_p12 = pmov %p4631_p0 }
  0x65   : > { %s2870_s20 = sshll.u32 %s4017_s2, 4  ;;  %v3541_v0 = vld [vmem:[#allocation2 + $0x18] sm:$0xff]   ;;  %v3542_v1 = vld [vmem:[#allocation2 + $0x10] sm:$0xff]   ;;  %s4635_s29 = sld [smem:[#allocation23_spill]]  ;;  %v3543_v2 = vld [vmem:[#allocation2 + $0x8] sm:$0xff]   ;;  %vm766_vm0 = vcmask 523264  }
  0x66   : > { %3860 = vsyncadd (%p4634_p12), [#allocation9], 4294965248  ;;  %p696_p10 = scmp.lt.s32.totalorder %s2870_s20, 31  ;;  %3127 = vmatprep.subr.bf16.mxu0 %v3541_v0  ;;  %v3544_v6 = vld [vmem:[#allocation2] sm:$0xff]   ;;  %s4636_s27 = sld [smem:[#allocation26_spill]]  ;;  %v3553_v36 = vld [vmem:[%s4580_s5 + $0x38] sm:$0xff]  }
  0x67   : > { %3128 = vmatpush3.bf16.msra.mxu0 %v3541_v0  ;;  %v3554_v37 = vld [vmem:[%s4580_s5 + $0x30] sm:$0xff]   ;;  %v3555_v38 = vld [vmem:[%s4580_s5 + $0x28] sm:$0xff]   ;;  %v3556_v39 = vld [vmem:[%s4580_s5 + $0x20] sm:$0xff]   ;;  %s4637_s21 = sld [smem:[#allocation27_spill]]  ;;  %s692_s1 = sand.u32 1, %s3871_s22  }
  0x68   : > { %s4649_s20 = smov (!%p696_p10, %s2870_s20), 31  ;;  %3129 = vmatprep.subr.bf16.mxu0 %v3542_v1  ;;  %v3557_v40 = vld [vmem:[%s4580_s5 + $0x18] sm:$0xff]   ;;  %v2872_v43 = vld [vmem:[#allocation5] ss:$0 sm:$0xff]  ;;  %s2974_s16 = sshll.u32 %s4017_s2, 11 }
  0x69   : > { %s2871_s3 = sshll.u32 %s4649_s20, 3  ;;  %s4535_s2 = scalar_lea.sflag [#allocation4], %s692_s1 }
  0x6b   : > { %s4135_s0 = scalar_lea.vmem %s4635_s29, %s2871_s3  ;;  %3130 = vmatpush3.bf16.msra.mxu0 %v3542_v1  ;;  %s4639_s3 = sld [smem:[#allocation29_spill]] }
  0x6c   : > { %v703_v3 = vld [vmem:[%s4135_s0] sm:$0xff]  ;;  %v704_v4 = vld [vmem:[%s4135_s0 + $0x8] sm:$0xff]  ;;  %3131 = vmatprep.subr.bf16.mxu0 %v3543_v2  ;;  %v705_v7 = vld [vmem:[%s4135_s0 + $0x10] sm:$0xff]  ;;  %s3888_s29 = smov [#allocation11]  }
  0x6d   : > { %v4139_v5 = vpack.c.bf16 %v704_v4, %v703_v3  ;;  %v706_v8 = vld [vmem:[%s4135_s0 + $0x18] sm:$0xff]  ;;  %v707_v9 = vld [vmem:[%s4135_s0 + $0x20] sm:$0xff]  ;;  %v3546_v11 = vld [vmem:[%s4636_s27 + $0x30] sm:$0xff]   ;;  %s3811_s26 = sshll.u32 %s3888_s29, 4  ;;  %s3812_s26 = int_to_ptr.vmem [resolvable:$false] %s3811_s26 }
  0x6e   : > { %v3545_v10 = vld [vmem:[%s4636_s27 + $0x38] sm:$0xff]   ;;  %v708_v12 = vld [vmem:[%s4135_s0 + $0x28] sm:$0xff]  ;;  %v4153_v13 = vpack.c.bf16 %v706_v8, %v705_v7  ;;  %v3548_v16 = vld [vmem:[%s4636_s27 + $0x20] sm:$0xff]  }
  0x6f   : > { %3135 = vmatprep.mubr.msk.bf16.mxu0 %vm766_vm0, %v4139_v5  ;;  %3132 = vmatpush3.bf16.msra.mxu0 %v3543_v2  ;;  %v3547_v14 = vld [vmem:[%s4636_s27 + $0x28] sm:$0xff]   ;;  %v4158_v15 = vpack.c.bf16 %v708_v12, %v707_v9  ;;  %v709_v17 = vld [vmem:[%s4135_s0 + $0x30] sm:$0xff]  ;;  %v710_v18 = vld [vmem:[%s4135_s0 + $0x38] sm:$0xff] }
  0x70   : > { %3133 = vmatprep.subr.bf16.mxu0 %v3544_v6  ;;  %3151 = vmatprep.subr.bf16.mxu1 %v3545_v10  ;;  %v711_v19 = vld [vmem:[%s4135_s0 + $0x40] sm:$0xff]  ;;  %v712_v20 = vld [vmem:[%s4135_s0 + $0x48] sm:$0xff]  ;;  %v3549_v21 = vld [vmem:[%s4636_s27 + $0x18] sm:$0xff]   ;;  %v4174_v22 = vpack.c.bf16 %v710_v18, %v709_v17 }
  0x71   : > { %3152 = vmatpush3.bf16.msra.mxu1 %v3545_v10  ;;  %v4176_v23 = vpack.c.bf16 %v712_v20, %v711_v19  ;;  %v713_v24 = vld [vmem:[%s4135_s0 + $0x50] sm:$0xff]  ;;  %v714_v25 = vld [vmem:[%s4135_s0 + $0x58] sm:$0xff]  ;;  %v715_v26 = vld [vmem:[%s4135_s0 + $0x60] sm:$0xff]  ;;  %s4527_s30 = scalar_lea.hbm %s4639_s3, %s2974_s16 }
  0x72   : > { %3153 = vmatprep.subr.bf16.mxu1 %v3546_v11  ;;  %v716_v27 = vld [vmem:[%s4135_s0 + $0x68] sm:$0xff]  ;;  %v4186_v28 = vpack.c.bf16 %v714_v25, %v713_v24  ;;  %v717_v30 = vld [vmem:[%s4135_s0 + $0x70] sm:$0xff]  ;;  %v718_v31 = vld [vmem:[%s4135_s0 + $0x78] sm:$0xff]  ;;  %s3813_s0 = scalar_lea.vmem %s3812_s26, 4096 }
  0x73   : > { %3134 = vmatpush3.bf16.msra.mxu0 %v3544_v6  ;;  %v4188_v29 = vpack.c.bf16 %v716_v27, %v715_v26  ;;  %v4196_v32 = vpack.c.bf16 %v718_v31, %v717_v30  ;;  %v3550_v33 = vld [vmem:[%s4636_s27 + $0x10] sm:$0xff]   ;;  %v3551_v34 = vld [vmem:[%s4636_s27 + $0x8] sm:$0xff]   ;;  %v3552_v35 = vld [vmem:[%s4636_s27] sm:$0xff]  }
  0x74   : > { %3183 = vmatprep.subr.bf16.mxu0 %v3553_v36 }
  0x75   : > { %3154 = vmatpush3.bf16.msra.mxu1 %v3546_v11 }
  0x76   : > { %3136 = vmatmul.mubr.msk.bf16.vlgmr.msra.gmra.mxu0 %vm766_vm0, %v4153_v13  ;;  %3155 = vmatprep.subr.bf16.mxu1 %v3547_v14 }
  0x77   : > { %3139 = vmatprep.mubr.msk.bf16.mxu0 %vm766_vm0, %v4158_v15  ;;  %3184 = vmatpush3.bf16.msra.mxu0 %v3553_v36 }
  0x78   : > { %3185 = vmatprep.subr.bf16.mxu0 %v3554_v37 }
  0x79   : > { %3156 = vmatpush3.bf16.msra.mxu1 %v3547_v14 }
  0x7a   : > { %3157 = vmatprep.subr.bf16.mxu1 %v3548_v16 }
  0x7b   : > { %3186 = vmatpush3.bf16.msra.mxu0 %v3554_v37 }
  0x7c   : > { %3187 = vmatprep.subr.bf16.mxu0 %v3555_v38 }
  0x7d   : > { %3158 = vmatpush3.bf16.msra.mxu1 %v3548_v16 }
  0x7e   : > { %3140 = vmatmul.mubr.msk.bf16.gmra.mxu0 %vm766_vm0, %v4174_v22  ;;  %3159 = vmatprep.subr.bf16.mxu1 %v3549_v21 }
  0x7f   : > { %3143 = vmatprep.mubr.msk.bf16.mxu0 %vm766_vm0, %v4176_v23  ;;  %3188 = vmatpush3.bf16.msra.mxu0 %v3555_v38 }
  0x80   : > { %3189 = vmatprep.subr.bf16.mxu0 %v3556_v39 }
  0x81   : > { %3160 = vmatpush3.bf16.msra.mxu1 %v3549_v21 }
  0x82   : > { %3161 = vmatprep.subr.bf16.mxu1 %v3550_v33 }
  0x83   : > { %3190 = vmatpush3.bf16.msra.mxu0 %v3556_v39 }
  0x84   : > { %3191 = vmatprep.subr.bf16.mxu0 %v3557_v40 }
  0x85   : > { %3162 = vmatpush3.bf16.msra.mxu1 %v3550_v33 }
  0x86   : > { %3144 = vmatmul.mubr.msk.bf16.gmra.mxu0 %vm766_vm0, %v4186_v28  ;;  %3163 = vmatprep.subr.bf16.mxu1 %v3551_v34 }
  0x87   : > { %3147 = vmatprep.mubr.msk.bf16.mxu0 %vm766_vm0, %v4188_v29  ;;  %3192 = vmatpush3.bf16.msra.mxu0 %v3557_v40 }
  0x89   : > { %3164 = vmatpush3.bf16.msra.mxu1 %v3551_v34 }
  0x8a   : > { %3165 = vmatprep.subr.bf16.mxu1 %v3552_v35 }
  0x8d   : > { %3166 = vmatpush3.bf16.msra.mxu1 %v3552_v35 }
  0x8e   : > { %3148 = vmatmul.mubr.msk.bf16.gmra.mxu0 %vm766_vm0, %v4196_v32 }
 0x136   : > { %v3137_v41 = vpop.f32.mrf.mxu0 }
 0x137   : > { %v834_v47 = vadd.f32 %v3137_v41, %v2872_v43 }
 0x138   : > { %v825_v42 = vpop.f32.mrf.mxu0 }
 0x139   : > { %v826_v45 = vadd.f32 %v2872_v43, %v825_v42  ;;  %v890_v54 = vmax.f32 %v834_v47, 0.0  ;;  %v3558_v42 = vld [vmem:[%s4580_s5 + $0x10] sm:$0xff]   ;;  %v3563_v47 = vld [vmem:[%s4582_s7 + $0x28] sm:$0xff]  }
 0x13a   : > { %v3138_v44 = vpop.f32.mrf.mxu0  ;;  %3193 = vmatprep.subr.bf16.mxu0 %v3558_v42 }
 0x13b   : > { %v837_v46 = vadd.f32 %v3138_v44, %v2872_v43  ;;  %v888_v52 = vmax.f32 %v826_v45, 0.0  ;;  %3194 = vmatpush3.bf16.msra.mxu0 %v3558_v42  ;;  %v3559_v44 = vld [vmem:[%s4580_s5 + $0x8] sm:$0xff]   ;;  %v3561_v45 = vld [vmem:[%s4582_s7 + $0x38] sm:$0xff]  }
 0x13c   : > { %v828_v48 = vpop.f32.mrf.mxu0  ;;  %3195 = vmatprep.subr.bf16.mxu0 %v3559_v44  ;;  %3215 = vmatprep.subr.bf16.mxu1 %v3561_v45 }
 0x13d   : > { %v829_v49 = vadd.f32 %v2872_v43, %v828_v48  ;;  %v891_v50 = vmax.f32 %v837_v46, 0.0  ;;  %v3562_v46 = vld [vmem:[%s4582_s7 + $0x30] sm:$0xff]   ;;  %v3564_v48 = vld [vmem:[%s4582_s7 + $0x20] sm:$0xff]  }
 0x13e   : > { %v3141_v51 = vpop.f32.mrf.mxu0 }
 0x13f   : > { %v889_v53 = vmax.f32 %v829_v49, 0.0  ;;  %v905_v57 = vpack.c.bf16 %v891_v50, %v890_v54  ;;  %v850_v61 = vadd.f32 %v3141_v51, %v2872_v43  ;;  %3196 = vmatpush3.bf16.msra.mxu0 %v3559_v44  ;;  %v3565_v49 = vld [vmem:[%s4582_s7 + $0x18] sm:$0xff]  }
 0x140   : > { %v841_v55 = vpop.f32.mrf.mxu0 }
 0x141   : > { %v904_v56 = vpack.c.bf16 %v889_v53, %v888_v52  ;;  %v842_v59 = vadd.f32 %v2872_v43, %v841_v55  ;;  %v894_v4 = vmax.f32 %v850_v61, 0.0  ;;  %v2885_v52 = vld [vmem:[%s4637_s21] ss:$0 sm:$0xff]  ;;  %s2869_s21 = sshll.u32 %s692_s1, 7 }
 0x142   : > { %v3142_v58 = vpop.f32.mrf.mxu0  ;;  %s4491_s23 = scalar_lea.vmem [#allocation11], %s2869_s21 }
 0x143   : > { %v853_v60 = vadd.f32 %v3142_v58, %v2872_v43  ;;  %3167 = vmatprep.mubr.bf16.mxu1 %v904_v56  ;;  %v892_v2 = vmax.f32 %v842_v59, 0.0  ;;  %s2743_s4 = sshll.u32 %s4491_s23, 4  ;;  %s4529_s4 = int_to_ptr.vmem [resolvable:$true] %s2743_s4 }
 0x144   : > { %v844_v62 = vpop.f32.mrf.mxu0  ;;  %3168 = vmatmul.mubr.bf16.vlgmr.msra.gmra.mxu1 %v905_v57  ;;  %s3807_s25 = scalar_lea.vmem %s4529_s4, 2048  ;;  %p3814_p7 = scmp.lt.s32.totalorder %s4529_s4, %s3812_s26 }
 0x145   : > { %v845_v63 = vadd.f32 %v2872_v43, %v844_v62  ;;  %v895_v0 = vmax.f32 %v853_v60, 0.0  ;;  %3216 = vmatpush3.bf16.msra.mxu1 %v3561_v45  ;;  %p3808_p2 = scmp.ne.s32.totalorder %s4529_s4, %s3807_s25  ;;  %p3815_p8 = scmp.lt.s32.totalorder %s3813_s0, %s3807_s25 }
 0x146   : > { %v3145_v1 = vpop.f32.mrf.mxu0  ;;  %3217 = vmatprep.subr.bf16.mxu1 %v3562_v46 }
 0x147   : > { %v893_v3 = vmax.f32 %v845_v63, 0.0  ;;  %v907_v8 = vpack.c.bf16 %v895_v0, %v894_v4  ;;  %v866_v12 = vadd.f32 %v3145_v1, %v2872_v43  ;;  %p3809_p4 = pnand %p3808_p2, %p4034_p5  ;;  %p3816_p13 = por %p3815_p8, %p3814_p7 }
 0x148   : > { %v857_v6 = vpop.f32.mrf.mxu0 }
 0x149   : > { %v906_v7 = vpack.c.bf16 %v893_v3, %v892_v2  ;;  %v858_v10 = vadd.f32 %v2872_v43, %v857_v6  ;;  %v898_v21 = vmax.f32 %v866_v12, 0.0  ;;  %3218 = vmatpush3.bf16.msra.mxu1 %v3562_v46  ;;  %p3810_p9 = pneg %p3809_p4 }
 0x14a   : > { %v3146_v9 = vpop.f32.mrf.mxu0  ;;  %3219 = vmatprep.subr.bf16.mxu1 %v3563_v47 }
 0x14b   : > { %v869_v11 = vadd.f32 %v3146_v9, %v2872_v43  ;;  %3171 = vmatprep.mubr.bf16.mxu1 %v906_v7  ;;  %v896_v19 = vmax.f32 %v858_v10, 0.0  ;;  %p3817_p11 = pnand %p3816_p13, %p3810_p9 }
 0x14c   : > { %v860_v14 = vpop.f32.mrf.mxu0  ;;  %3172 = vmatmul.mubr.bf16.gmra.mxu1 %v907_v8 }
 0x14d   : > { %v861_v16 = vadd.f32 %v2872_v43, %v860_v14  ;;  %v899_v17 = vmax.f32 %v869_v11, 0.0  ;;  %3220 = vmatpush3.bf16.msra.mxu1 %v3563_v47 }
 0x14e   : > { %v3149_v18 = vpop.f32.mrf.mxu0  ;;  %3221 = vmatprep.subr.bf16.mxu1 %v3564_v48 }
 0x14f   : > { %v897_v20 = vmax.f32 %v861_v16, 0.0  ;;  %v909_v26 = vpack.c.bf16 %v899_v17, %v898_v21  ;;  %v882_v33 = vadd.f32 %v3149_v18, %v2872_v43 }
 0x150   : > { %v873_v24 = vpop.f32.mrf.mxu0 }
 0x151   : > { %v908_v25 = vpack.c.bf16 %v897_v20, %v896_v19  ;;  %v874_v30 = vadd.f32 %v2872_v43, %v873_v24  ;;  %v902_v39 = vmax.f32 %v882_v33, 0.0  ;;  %3222 = vmatpush3.bf16.msra.mxu1 %v3564_v48 }
 0x152   : > { %v3150_v27 = vpop.f32.mrf.mxu0  ;;  %3223 = vmatprep.subr.bf16.mxu1 %v3565_v49 }
 0x153   : > { %v885_v31 = vadd.f32 %v3150_v27, %v2872_v43  ;;  %3175 = vmatprep.mubr.bf16.mxu1 %v908_v25  ;;  %v900_v37 = vmax.f32 %v874_v30, 0.0 }
 0x154   : > { %v876_v34 = vpop.f32.mrf.mxu0  ;;  %3176 = vmatmul.mubr.bf16.gmra.mxu1 %v909_v26 }
 0x155   : > { %v877_v35 = vadd.f32 %v2872_v43, %v876_v34  ;;  %v903_v36 = vmax.f32 %v885_v31, 0.0  ;;  %v3560_v43 = vld [vmem:[%s4580_s5] sm:$0xff]   ;;  %3224 = vmatpush3.bf16.msra.mxu1 %v3565_v49 }
 0x156   : > { %3197 = vmatprep.subr.bf16.mxu0 %v3560_v43 }
 0x157   : > { %v901_v38 = vmax.f32 %v877_v35, 0.0  ;;  %v911_v41 = vpack.c.bf16 %v903_v36, %v902_v39  ;;  %3198 = vmatpush3.bf16.msra.mxu0 %v3560_v43 }
 0x159   : > { %v910_v40 = vpack.c.bf16 %v901_v38, %v900_v37 }
 0x15b   : > { %3179 = vmatprep.mubr.bf16.mxu1 %v910_v40 }
 0x15c   : > { %3180 = vmatmul.mubr.bf16.gmra.mxu1 %v911_v41 }
 0x204   : > { %v3169_v50 = vpop.f32.mrf.mxu1 }
 0x205   : > { %v1026_v56 = vadd.f32 %v3169_v50, %v2885_v52 }
 0x206   : > { %v1017_v51 = vpop.f32.mrf.mxu1 }
 0x207   : > { %v1018_v54 = vadd.f32 %v2885_v52, %v1017_v51  ;;  %v1082_v63 = vmax.f32 %v1026_v56, 0.0  ;;  %v3566_v51 = vld [vmem:[%s4582_s7 + $0x10] sm:$0xff]  }
 0x208   : > { %v3170_v53 = vpop.f32.mrf.mxu1  ;;  %3225 = vmatprep.subr.bf16.mxu1 %v3566_v51  ;;  %v3575_v56 = vld [vmem:[#allocation7 + $0x8] sm:$0xff]  }
 0x209   : > { %v1029_v55 = vadd.f32 %v3170_v53, %v2885_v52  ;;  %v1080_v61 = vmax.f32 %v1018_v54, 0.0  ;;  %3226 = vmatpush3.bf16.msra.mxu1 %v3566_v51  ;;  %v3568_v53 = vld [vmem:[%s4582_s7] sm:$0xff]  }
 0x20a   : > { %v1020_v57 = vpop.f32.mrf.mxu1  ;;  %v3569_v54 = vld [vmem:[#allocation7 + $0x18] sm:$0xff]  }
 0x20b   : > { %v1021_v58 = vadd.f32 %v2885_v52, %v1020_v57  ;;  %v1083_v59 = vmax.f32 %v1029_v55, 0.0  ;;  %v3572_v55 = vld [vmem:[#allocation7 + $0x10] sm:$0xff]   ;;  %3247 = vmatprep.subr.bf16.mxu0 %v3569_v54 }
 0x20c   : > { %v3173_v60 = vpop.f32.mrf.mxu1 }
 0x20d   : > { %v1081_v62 = vmax.f32 %v1021_v58, 0.0  ;;  %v1097_v2 = vpack.c.bf16 %v1083_v59, %v1082_v63  ;;  %v1042_v7 = vadd.f32 %v3173_v60, %v2885_v52  ;;  %v4268_v59 = vld [vmem:[%s4581_s6] ss:$0 sm:$0xff] }
 0x20e   : > { %v1033_v0 = vpop.f32.mrf.mxu1 }
 0x20f   : > { %v1096_v1 = vpack.c.bf16 %v1081_v62, %v1080_v61  ;;  %v1034_v4 = vadd.f32 %v2885_v52, %v1033_v0  ;;  %v1086_v16 = vmax.f32 %v1042_v7, 0.0 }
 0x210   : > { %v3174_v3 = vpop.f32.mrf.mxu1 }
 0x211   : > { %v1045_v6 = vadd.f32 %v3174_v3, %v2885_v52  ;;  %3199 = vmatprep.mubr.bf16.mxu0 %v1096_v1  ;;  %v1084_v12 = vmax.f32 %v1034_v4, 0.0 }
 0x212   : > { %v1036_v8 = vpop.f32.mrf.mxu1  ;;  %3200 = vmatmul.mubr.bf16.vlgmr.msra.gmra.mxu0 %v1097_v2 }
 0x213   : > { %v1037_v9 = vadd.f32 %v2885_v52, %v1036_v8  ;;  %v1087_v10 = vmax.f32 %v1045_v6, 0.0  ;;  %3248 = vmatpush3.bf16.msra.mxu0 %v3569_v54 }
 0x214   : > { %v3177_v11 = vpop.f32.mrf.mxu1  ;;  %3249 = vmatprep.subr.bf16.mxu0 %v3572_v55 }
 0x215   : > { %v1085_v14 = vmax.f32 %v1037_v9, 0.0  ;;  %v1099_v19 = vpack.c.bf16 %v1087_v10, %v1086_v16  ;;  %v1058_v25 = vadd.f32 %v3177_v11, %v2885_v52 }
 0x216   : > { %v1049_v17 = vpop.f32.mrf.mxu1 }
 0x217   : > { %v1098_v18 = vpack.c.bf16 %v1085_v14, %v1084_v12  ;;  %v1050_v21 = vadd.f32 %v2885_v52, %v1049_v17  ;;  %v1090_v35 = vmax.f32 %v1058_v25, 0.0  ;;  %3250 = vmatpush3.bf16.msra.mxu0 %v3572_v55  ;;  %v3571_v12 = vld [vmem:[%s4584_s9 + $0x30] sm:$0xff]  }
 0x218   : > { %v3178_v20 = vpop.f32.mrf.mxu1  ;;  %3251 = vmatprep.subr.bf16.mxu0 %v3575_v56 }
 0x219   : > { %v1061_v24 = vadd.f32 %v3178_v20, %v2885_v52  ;;  %3203 = vmatprep.mubr.bf16.mxu0 %v1098_v18  ;;  %v1088_v33 = vmax.f32 %v1050_v21, 0.0 }
 0x21a   : > { %v1052_v26 = vpop.f32.mrf.mxu1  ;;  %3204 = vmatmul.mubr.bf16.gmra.mxu0 %v1099_v19 }
 0x21b   : > { %v1053_v27 = vadd.f32 %v2885_v52, %v1052_v26  ;;  %v1091_v30 = vmax.f32 %v1061_v24, 0.0  ;;  %3252 = vmatpush3.bf16.msra.mxu0 %v3575_v56  ;;  %v3573_v24 = vld [vmem:[%s4584_s9 + $0x28] sm:$0xff]  }
 0x21c   : > { %v3181_v31 = vpop.f32.mrf.mxu1 }
 0x21d   : > { %v1089_v34 = vmax.f32 %v1053_v27, 0.0  ;;  %v1101_v38 = vpack.c.bf16 %v1091_v30, %v1090_v35  ;;  %v1074_v42 = vadd.f32 %v3181_v31, %v2885_v52  ;;  %v3574_v35 = vld [vmem:[%s4584_s9 + $0x20] sm:$0xff]  }
 0x21e   : > { %v1065_v36 = vpop.f32.mrf.mxu1 }
 0x21f   : > { %v1100_v37 = vpack.c.bf16 %v1089_v34, %v1088_v33  ;;  %v1066_v40 = vadd.f32 %v2885_v52, %v1065_v36  ;;  %v1094_v48 = vmax.f32 %v1074_v42, 0.0 }
 0x220   : > { %v3182_v39 = vpop.f32.mrf.mxu1 }
 0x221   : > { %v1077_v41 = vadd.f32 %v3182_v39, %v2885_v52  ;;  %3207 = vmatprep.mubr.bf16.mxu0 %v1100_v37  ;;  %v1092_v46 = vmax.f32 %v1066_v40, 0.0 }
 0x222   : > { %v1068_v44 = vpop.f32.mrf.mxu1  ;;  %3208 = vmatmul.mubr.bf16.gmra.mxu0 %v1101_v38 }
 0x223   : > { %v1069_v43 = vadd.f32 %v2885_v52, %v1068_v44  ;;  %v1095_v45 = vmax.f32 %v1077_v41, 0.0  ;;  %v3567_v52 = vld [vmem:[%s4582_s7 + $0x8] sm:$0xff]   ;;  %v3576_v44 = vld [vmem:[%s4584_s9 + $0x18] sm:$0xff]  }
 0x224   : > { %3227 = vmatprep.subr.bf16.mxu1 %v3567_v52 }
 0x225   : > { %v1093_v47 = vmax.f32 %v1069_v43, 0.0  ;;  %v1103_v50 = vpack.c.bf16 %v1095_v45, %v1094_v48  ;;  %3228 = vmatpush3.bf16.msra.mxu1 %v3567_v52 }
 0x226   : > { %3229 = vmatprep.subr.bf16.mxu1 %v3568_v53 }
 0x227   : > { %v1102_v49 = vpack.c.bf16 %v1093_v47, %v1092_v46 }
 0x229   : > { %3211 = vmatprep.mubr.bf16.mxu0 %v1102_v49  ;;  %3230 = vmatpush3.bf16.msra.mxu1 %v3568_v53 }
 0x22a   : > { %3212 = vmatmul.mubr.bf16.gmra.mxu0 %v1103_v50 }
 0x22b   : > { %3255 = vmatprep.mubr.msk.bf16.mxu0 %vm766_vm0, %v4139_v5  ;;  %v3570_v5 = vld [vmem:[%s4584_s9 + $0x38] sm:$0xff]  }
 0x22c   : > { %3271 = vmatprep.subr.bf16.mxu1 %v3570_v5 }
 0x2d2   : > { %v3201_v57 = vpop.f32.mrf.mxu0 }
 0x2d3   : > { %v1218_v63 = vadd.f32 %v3201_v57, %v4268_v59 }
 0x2d4   : > { %v1209_v58 = vpop.f32.mrf.mxu0 }
 0x2d5   : > { %v1210_v61 = vadd.f32 %v4268_v59, %v1209_v58  ;;  %v1274_v7 = vmax.f32 %v1218_v63, 0.0  ;;  %v3578_v63 = vld [vmem:[#allocation7] sm:$0xff]  }
 0x2d6   : > { %v3202_v60 = vpop.f32.mrf.mxu0  ;;  %3253 = vmatprep.subr.bf16.mxu0 %v3578_v63 }
 0x2d7   : > { %v1221_v62 = vadd.f32 %v3202_v60, %v4268_v59  ;;  %v1272_v4 = vmax.f32 %v1210_v61, 0.0  ;;  %3254 = vmatpush3.bf16.msra.mxu0 %v3578_v63 }
 0x2d8   : > { %v1212_v0 = vpop.f32.mrf.mxu0 }
 0x2d9   : > { %v1213_v1 = vadd.f32 %v4268_v59, %v1212_v0  ;;  %v1275_v2 = vmax.f32 %v1221_v62, 0.0  ;;  %v3577_v62 = vld [vmem:[%s4584_s9 + $0x10] sm:$0xff]   ;;  %v3580_v0 = vld [vmem:[%s4584_s9] sm:$0xff]  }
 0x2da   : > { %v3205_v3 = vpop.f32.mrf.mxu0  ;;  %3256 = vmatmul.mubr.msk.bf16.vlgmr.msra.gmra.mxu0 %vm766_vm0, %v4153_v13  ;;  %v3581_v13 = vld [vmem:[%s4587_s12 + $0x38] sm:$0xff]  }
 0x2db   : > { %v1273_v6 = vmax.f32 %v1213_v1, 0.0  ;;  %v1289_v10 = vpack.c.bf16 %v1275_v2, %v1274_v7  ;;  %v1234_v17 = vadd.f32 %v3205_v3, %v4268_v59  ;;  %3259 = vmatprep.mubr.msk.bf16.mxu0 %vm766_vm0, %v4158_v15  ;;  %v3582_v15 = vld [vmem:[%s4587_s12 + $0x30] sm:$0xff]   ;;  %3303 = vmatprep.subr.bf16.mxu0 %v3581_v13  ;;  %v2903_v1 = vld [vmem:[%s4583_s8] ss:$0 sm:$0xff] }
 0x2dc   : > { %v1225_v8 = vpop.f32.mrf.mxu0  ;;  %3304 = vmatpush3.bf16.msra.mxu0 %v3581_v13  ;;  %v3588_v13 = vld [vmem:[%s4587_s12] sm:$0xff]  }
 0x2dd   : > { %v1288_v9 = vpack.c.bf16 %v1273_v6, %v1272_v4  ;;  %v1226_v14 = vadd.f32 %v4268_v59, %v1225_v8  ;;  %v1278_v27 = vmax.f32 %v1234_v17, 0.0  ;;  %3305 = vmatprep.subr.bf16.mxu0 %v3582_v15 }
 0x2de   : > { %v3206_v11 = vpop.f32.mrf.mxu0 }
 0x2df   : > { %v1237_v16 = vadd.f32 %v3206_v11, %v4268_v59  ;;  %3231 = vmatprep.mubr.bf16.mxu1 %v1288_v9  ;;  %v1276_v25 = vmax.f32 %v1226_v14, 0.0 }
 0x2e0   : > { %v1228_v18 = vpop.f32.mrf.mxu0  ;;  %3232 = vmatmul.mubr.bf16.vlgmr.msra.gmra.mxu1 %v1289_v10  ;;  %3306 = vmatpush3.bf16.msra.mxu0 %v3582_v15  ;;  %v3589_v15 = vld [vmem:[%s4589_s14 + $0x38] sm:$0xff]  }
 0x2e1   : > { %v1229_v19 = vadd.f32 %v4268_v59, %v1228_v18  ;;  %3272 = vmatpush3.bf16.msra.mxu1 %v3570_v5  ;;  %v1279_v20 = vmax.f32 %v1237_v16, 0.0 }
 0x2e2   : > { %v3209_v21 = vpop.f32.mrf.mxu0  ;;  %3273 = vmatprep.subr.bf16.mxu1 %v3571_v12  ;;  %3260 = vmatmul.mubr.msk.bf16.gmra.mxu0 %vm766_vm0, %v4174_v22  ;;  %v3583_v22 = vld [vmem:[%s4587_s12 + $0x28] sm:$0xff]  }
 0x2e3   : > { %v1277_v26 = vmax.f32 %v1229_v19, 0.0  ;;  %v1291_v33 = vpack.c.bf16 %v1279_v20, %v1278_v27  ;;  %v1250_v38 = vadd.f32 %v3209_v21, %v4268_v59  ;;  %3263 = vmatprep.mubr.msk.bf16.mxu0 %vm766_vm0, %v4176_v23  ;;  %3307 = vmatprep.subr.bf16.mxu0 %v3583_v22  ;;  %v3584_v23 = vld [vmem:[%s4587_s12 + $0x20] sm:$0xff]  }
 0x2e4   : > { %v1241_v30 = vpop.f32.mrf.mxu0  ;;  %3308 = vmatpush3.bf16.msra.mxu0 %v3583_v22  ;;  %v3590_v22 = vld [vmem:[%s4589_s14 + $0x30] sm:$0xff]  }
 0x2e5   : > { %v1290_v31 = vpack.c.bf16 %v1277_v26, %v1276_v25  ;;  %3274 = vmatpush3.bf16.msra.mxu1 %v3571_v12  ;;  %v1242_v36 = vadd.f32 %v4268_v59, %v1241_v30  ;;  %v1282_v46 = vmax.f32 %v1250_v38, 0.0  ;;  %3309 = vmatprep.subr.bf16.mxu0 %v3584_v23 }
 0x2e6   : > { %v3210_v34 = vpop.f32.mrf.mxu0  ;;  %3275 = vmatprep.subr.bf16.mxu1 %v3573_v24 }
 0x2e7   : > { %v1253_v37 = vadd.f32 %v3210_v34, %v4268_v59  ;;  %3235 = vmatprep.mubr.bf16.mxu1 %v1290_v31  ;;  %v1280_v43 = vmax.f32 %v1242_v36, 0.0 }
 0x2e8   : > { %v1244_v39 = vpop.f32.mrf.mxu0  ;;  %3236 = vmatmul.mubr.bf16.gmra.mxu1 %v1291_v33  ;;  %3310 = vmatpush3.bf16.msra.mxu0 %v3584_v23  ;;  %v3591_v23 = vld [vmem:[%s4589_s14 + $0x28] sm:$0xff]  }
 0x2e9   : > { %v1245_v40 = vadd.f32 %v4268_v59, %v1244_v39  ;;  %3276 = vmatpush3.bf16.msra.mxu1 %v3573_v24  ;;  %v1283_v41 = vmax.f32 %v1253_v37, 0.0 }
 0x2ea   : > { %v3213_v42 = vpop.f32.mrf.mxu0  ;;  %3277 = vmatprep.subr.bf16.mxu1 %v3574_v35  ;;  %3264 = vmatmul.mubr.msk.bf16.gmra.mxu0 %vm766_vm0, %v4186_v28  ;;  %v3585_v28 = vld [vmem:[%s4587_s12 + $0x18] sm:$0xff]  }
 0x2eb   : > { %v1281_v45 = vmax.f32 %v1245_v40, 0.0  ;;  %v1293_v49 = vpack.c.bf16 %v1283_v41, %v1282_v46  ;;  %v1266_v53 = vadd.f32 %v3213_v42, %v4268_v59  ;;  %3267 = vmatprep.mubr.msk.bf16.mxu0 %vm766_vm0, %v4188_v29  ;;  %3311 = vmatprep.subr.bf16.mxu0 %v3585_v28 }
 0x2ec   : > { %v1257_v47 = vpop.f32.mrf.mxu0  ;;  %3312 = vmatpush3.bf16.msra.mxu0 %v3585_v28  ;;  %v3592_v28 = vld [vmem:[%s4589_s14 + $0x20] sm:$0xff]  }
 0x2ed   : > { %v1292_v48 = vpack.c.bf16 %v1281_v45, %v1280_v43  ;;  %3278 = vmatpush3.bf16.msra.mxu1 %v3574_v35  ;;  %v1258_v51 = vadd.f32 %v4268_v59, %v1257_v47  ;;  %v1286_v58 = vmax.f32 %v1266_v53, 0.0 }
 0x2ee   : > { %v3214_v50 = vpop.f32.mrf.mxu0  ;;  %3279 = vmatprep.subr.bf16.mxu1 %v3576_v44 }
 0x2ef   : > { %v1269_v52 = vadd.f32 %v3214_v50, %v4268_v59  ;;  %3239 = vmatprep.mubr.bf16.mxu1 %v1292_v48  ;;  %v1284_v56 = vmax.f32 %v1258_v51, 0.0 }
 0x2f0   : > { %v1260_v54 = vpop.f32.mrf.mxu0  ;;  %3240 = vmatmul.mubr.bf16.gmra.mxu1 %v1293_v49 }
 0x2f1   : > { %v1261_v5 = vadd.f32 %v4268_v59, %v1260_v54  ;;  %3280 = vmatpush3.bf16.msra.mxu1 %v3576_v44  ;;  %v1287_v55 = vmax.f32 %v1269_v52, 0.0  ;;  %v3579_v59 = vld [vmem:[%s4584_s9 + $0x8] sm:$0xff]  }
 0x2f2   : > { %3281 = vmatprep.subr.bf16.mxu1 %v3577_v62  ;;  %3268 = vmatmul.mubr.msk.bf16.gmra.mxu0 %vm766_vm0, %v4196_v32 }
 0x2f3   : > { %v1285_v57 = vmax.f32 %v1261_v5, 0.0  ;;  %v1295_v61 = vpack.c.bf16 %v1287_v55, %v1286_v58 }
 0x2f5   : > { %v1294_v60 = vpack.c.bf16 %v1285_v57, %v1284_v56  ;;  %3282 = vmatpush3.bf16.msra.mxu1 %v3577_v62 }
 0x2f6   : > { %3283 = vmatprep.subr.bf16.mxu1 %v3579_v59 }
 0x2f7   : > { %3243 = vmatprep.mubr.bf16.mxu1 %v1294_v60 }
 0x2f8   : > { %3244 = vmatmul.mubr.bf16.gmra.mxu1 %v1295_v61 }
 0x2f9   : > { %3284 = vmatpush3.bf16.msra.mxu1 %v3579_v59  ;;  %v3586_v59 = vld [vmem:[%s4587_s12 + $0x10] sm:$0xff]  }
 0x2fa   : > { %3285 = vmatprep.subr.bf16.mxu1 %v3580_v0  ;;  %3313 = vmatprep.subr.bf16.mxu0 %v3586_v59 }
 0x2fb   : > { %3314 = vmatpush3.bf16.msra.mxu0 %v3586_v59 }
 0x2fd   : > { %3286 = vmatpush3.bf16.msra.mxu1 %v3580_v0  ;;  %v3587_v0 = vld [vmem:[%s4587_s12 + $0x8] sm:$0xff]  }
 0x2fe   : > { %3315 = vmatprep.subr.bf16.mxu0 %v3587_v0  ;;  %3335 = vmatprep.subr.bf16.mxu1 %v3589_v15 }
 0x2ff   : > { %3316 = vmatpush3.bf16.msra.mxu0 %v3587_v0 }
 0x300   : > { %3317 = vmatprep.subr.bf16.mxu0 %v3588_v13 }
 0x303   : > { %3318 = vmatpush3.bf16.msra.mxu0 %v3588_v13 }
 0x3a0   : > { %v3233_v29 = vpop.f32.mrf.mxu1 }
 0x3a1   : > { %v1410_v6 = vadd.f32 %v3233_v29, %v2903_v1  ;;  %v3593_v29 = vld [vmem:[%s4589_s14 + $0x18] sm:$0xff]  }
 0x3a2   : > { %v1401_v32 = vpop.f32.mrf.mxu1 }
 0x3a3   : > { %v1402_v3 = vadd.f32 %v2903_v1, %v1401_v32  ;;  %v1466_v14 = vmax.f32 %v1410_v6, 0.0  ;;  %v3257_v32 = vpop.f32.mrf.mxu0 }
 0x3a4   : > { %v3234_v2 = vpop.f32.mrf.mxu1 }
 0x3a5   : > { %v1413_v4 = vadd.f32 %v3234_v2, %v2903_v1  ;;  %v1464_v11 = vmax.f32 %v1402_v3, 0.0 }
 0x3a6   : > { %v1404_v7 = vpop.f32.mrf.mxu1 }
 0x3a7   : > { %v1405_v8 = vadd.f32 %v2903_v1, %v1404_v7  ;;  %v1467_v9 = vmax.f32 %v1413_v4, 0.0 }
 0x3a8   : > { %v3237_v10 = vpop.f32.mrf.mxu1 }
 0x3a9   : > { %v1465_v12 = vmax.f32 %v1405_v8, 0.0  ;;  %v1481_v18 = vpack.c.bf16 %v1467_v9, %v1466_v14  ;;  %v1426_v24 = vadd.f32 %v3237_v10, %v2903_v1 }
 0x3aa   : > { %v1417_v16 = vpop.f32.mrf.mxu1 }
 0x3ab   : > { %v1480_v17 = vpack.c.bf16 %v1465_v12, %v1464_v11  ;;  %v1418_v20 = vadd.f32 %v2903_v1, %v1417_v16  ;;  %v1470_v34 = vmax.f32 %v1426_v24, 0.0 }
 0x3ac   : > { %v3238_v19 = vpop.f32.mrf.mxu1 }
 0x3ad   : > { %v1429_v21 = vadd.f32 %v3238_v19, %v2903_v1  ;;  %3287 = vmatprep.mubr.bf16.mxu1 %v1480_v17  ;;  %v1468_v31 = vmax.f32 %v1418_v20, 0.0  ;;  %v4366_v17 = vld [vmem:[%s4586_s11] ss:$0 sm:$0xff] }
 0x3ae   : > { %v1420_v25 = vpop.f32.mrf.mxu1  ;;  %3288 = vmatmul.mubr.bf16.vlgmr.msra.gmra.mxu1 %v1481_v18 }
 0x3af   : > { %v1421_v26 = vadd.f32 %v2903_v1, %v1420_v25  ;;  %v1471_v27 = vmax.f32 %v1429_v21, 0.0  ;;  %3336 = vmatpush3.bf16.msra.mxu1 %v3589_v15 }
 0x3b0   : > { %v3241_v30 = vpop.f32.mrf.mxu1  ;;  %3337 = vmatprep.subr.bf16.mxu1 %v3590_v22 }
 0x3b1   : > { %v1469_v33 = vmax.f32 %v1421_v26, 0.0  ;;  %v1483_v37 = vpack.c.bf16 %v1471_v27, %v1470_v34  ;;  %v1442_v41 = vadd.f32 %v3241_v30, %v2903_v1 }
 0x3b2   : > { %v1433_v35 = vpop.f32.mrf.mxu1 }
 0x3b3   : > { %v1482_v36 = vpack.c.bf16 %v1469_v33, %v1468_v31  ;;  %v1434_v39 = vadd.f32 %v2903_v1, %v1433_v35  ;;  %v1474_v48 = vmax.f32 %v1442_v41, 0.0  ;;  %3338 = vmatpush3.bf16.msra.mxu1 %v3590_v22 }
 0x3b4   : > { %v3242_v38 = vpop.f32.mrf.mxu1  ;;  %3339 = vmatprep.subr.bf16.mxu1 %v3591_v23 }
 0x3b5   : > { %v1445_v40 = vadd.f32 %v3242_v38, %v2903_v1  ;;  %3291 = vmatprep.mubr.bf16.mxu1 %v1482_v36  ;;  %v1472_v46 = vmax.f32 %v1434_v39, 0.0 }
 0x3b6   : > { %v1436_v42 = vpop.f32.mrf.mxu1  ;;  %3292 = vmatmul.mubr.bf16.gmra.mxu1 %v1483_v37 }
 0x3b7   : > { %v1437_v44 = vadd.f32 %v2903_v1, %v1436_v42  ;;  %v1475_v43 = vmax.f32 %v1445_v40, 0.0  ;;  %3340 = vmatpush3.bf16.msra.mxu1 %v3591_v23 }
 0x3b8   : > { %v3245_v45 = vpop.f32.mrf.mxu1  ;;  %3341 = vmatprep.subr.bf16.mxu1 %v3592_v28 }
 0x3b9   : > { %v1473_v47 = vmax.f32 %v1437_v44, 0.0  ;;  %v1485_v51 = vpack.c.bf16 %v1475_v43, %v1474_v48  ;;  %v1458_v5 = vadd.f32 %v3245_v45, %v2903_v1 }
 0x3ba   : > { %v1449_v49 = vpop.f32.mrf.mxu1 }
 0x3bb   : > { %v1484_v50 = vpack.c.bf16 %v1473_v47, %v1472_v46  ;;  %v1450_v53 = vadd.f32 %v2903_v1, %v1449_v49  ;;  %v1478_v61 = vmax.f32 %v1458_v5, 0.0  ;;  %3342 = vmatpush3.bf16.msra.mxu1 %v3592_v28 }
 0x3bc   : > { %v3246_v52 = vpop.f32.mrf.mxu1  ;;  %3343 = vmatprep.subr.bf16.mxu1 %v3593_v29 }
 0x3bd   : > { %v1461_v54 = vadd.f32 %v3246_v52, %v2903_v1  ;;  %3295 = vmatprep.mubr.bf16.mxu1 %v1484_v50  ;;  %v1476_v58 = vmax.f32 %v1450_v53, 0.0 }
 0x3be   : > { %v1452_v55 = vpop.f32.mrf.mxu1  ;;  %3296 = vmatmul.mubr.bf16.gmra.mxu1 %v1485_v51 }
 0x3bf   : > { %v1453_v56 = vadd.f32 %v2903_v1, %v1452_v55  ;;  %v1479_v57 = vmax.f32 %v1461_v54, 0.0  ;;  %3344 = vmatpush3.bf16.msra.mxu1 %v3593_v29  ;;  %v1571_v1 = vpop.f32.mrf.mxu0 }
 0x3c1   : > { %v1477_v60 = vmax.f32 %v1453_v56, 0.0  ;;  %v1487_v63 = vpack.c.bf16 %v1479_v57, %v1478_v61  ;;  %v3258_v2 = vpop.f32.mrf.mxu0 }
 0x3c3   : > { %v1486_v62 = vpack.c.bf16 %v1477_v60, %v1476_v58  ;;  %v1574_v3 = vpop.f32.mrf.mxu0 }
 0x3c5   : > { %3299 = vmatprep.mubr.bf16.mxu1 %v1486_v62  ;;  %v3261_v4 = vpop.f32.mrf.mxu0 }
 0x3c6   : > { %3300 = vmatmul.mubr.bf16.gmra.mxu1 %v1487_v63 }
 0x3c7   : > { %v1587_v6 = vpop.f32.mrf.mxu0 }
 0x3c9   : > { %v3262_v7 = vpop.f32.mrf.mxu0 }
 0x3cb   : > { %v1590_v8 = vpop.f32.mrf.mxu0 }
 0x3cd   : > { %v3265_v11 = vpop.f32.mrf.mxu0 }
 0x3cf   : > { %v1603_v20 = vpop.f32.mrf.mxu0 }
 0x3d1   : > { %v3266_v34 = vpop.f32.mrf.mxu0 }
 0x3d3   : > { %v1606_v45 = vpop.f32.mrf.mxu0 }
 0x3d5   : > { %v3269_v53 = vpop.f32.mrf.mxu0 }
 0x3d7   : > { %v1619_v63 = vpop.f32.mrf.mxu0 }
 0x46e   : > { %v3289_v9 = vpop.f32.mrf.mxu1 }
 0x46f   : > { %v1725_v14 = vadd.f32 %v3289_v9, %v3257_v32 }
 0x470   : > { %v1716_v10 = vpop.f32.mrf.mxu1 }
 0x471   : > { %v1717_v12 = vadd.f32 %v1716_v10, %v1571_v1  ;;  %v1787_v26 = vadd.f32 %v4366_v17, %v1725_v14  ;;  %v3270_v1 = vpop.f32.mrf.mxu0 }
 0x472   : > { %v3290_v16 = vpop.f32.mrf.mxu1 }
 0x473   : > { %v1728_v18 = vadd.f32 %v3290_v16, %v3258_v2  ;;  %v1785_v21 = vadd.f32 %v4366_v17, %v1717_v12  ;;  %v1803_v38 = vmax.f32 %v1787_v26, 0.0  ;;  %v1622_v12 = vpop.f32.mrf.mxu0 }
 0x474   : > { %v1719_v19 = vpop.f32.mrf.mxu1 }
 0x475   : > { %v1788_v24 = vadd.f32 %v4366_v17, %v1728_v18  ;;  %v1720_v25 = vadd.f32 %v1719_v19, %v1574_v3  ;;  %v1801_v35 = vmax.f32 %v1785_v21, 0.0 }
 0x476   : > { %v3293_v27 = vpop.f32.mrf.mxu1 }
 0x477   : > { %v1786_v30 = vadd.f32 %v4366_v17, %v1720_v25  ;;  %v1804_v31 = vmax.f32 %v1788_v24, 0.0  ;;  %v1741_v39 = vadd.f32 %v3293_v27, %v3261_v4 }
 0x478   : > { %v1732_v33 = vpop.f32.mrf.mxu1 }
 0x479   : > { %v1802_v36 = vmax.f32 %v1786_v30, 0.0  ;;  %v1733_v37 = vadd.f32 %v1732_v33, %v1587_v6  ;;  %v1818_v44 = vpack.c.bf16 %v1804_v31, %v1803_v38  ;;  %v1791_v49 = vadd.f32 %v4366_v17, %v1741_v39  ;;  %v3599_v38 = vld [vmem:[#allocation8 + $0x28] sm:$0xff]   ;;  %v3600_v39 = vld [vmem:[#allocation8 + $0x20] sm:$0xff]  }
 0x47a   : > { %v3294_v40 = vpop.f32.mrf.mxu1 }
 0x47b   : > { %v1744_v41 = vadd.f32 %v3294_v40, %v3262_v7  ;;  %v1817_v42 = vpack.c.bf16 %v1802_v36, %v1801_v35  ;;  %v1789_v46 = vadd.f32 %v4366_v17, %v1733_v37  ;;  %v1807_v57 = vmax.f32 %v1791_v49, 0.0  ;;  %v3595_v35 = vld [vmem:[%s4589_s14 + $0x8] sm:$0xff]   ;;  %v3597_v36 = vld [vmem:[#allocation8 + $0x38] sm:$0xff]   ;;  %v3598_v37 = vld [vmem:[#allocation8 + $0x30] sm:$0xff]  }
 0x47c   : > { %v1735_v43 = vpop.f32.mrf.mxu1  ;;  %3367 = vmatprep.subr.bf16.mxu0 %v3597_v36  ;;  %v3601_v40 = vld [vmem:[#allocation8 + $0x18] sm:$0xff]  }
 0x47d   : > { %v1792_v47 = vadd.f32 %v4366_v17, %v1744_v41  ;;  %v1736_v48 = vadd.f32 %v1735_v43, %v1590_v8  ;;  %3319 = vmatprep.mubr.bf16.mxu0 %v1817_v42  ;;  %v1805_v5 = vmax.f32 %v1789_v46, 0.0 }
 0x47e   : > { %v3297_v50 = vpop.f32.mrf.mxu1  ;;  %3320 = vmatmul.mubr.bf16.vlgmr.msra.gmra.mxu0 %v1818_v44  ;;  %v2933_v44 = vld [vmem:[%s4588_s13] ss:$0 sm:$0xff] }
 0x47f   : > { %v1790_v51 = vadd.f32 %v4366_v17, %v1736_v48  ;;  %v1808_v52 = vmax.f32 %v1792_v47, 0.0  ;;  %v1757_v58 = vadd.f32 %v3297_v50, %v3265_v11  ;;  %3368 = vmatpush3.bf16.msra.mxu0 %v3597_v36  ;;  %v3604_v36 = vld [vmem:[#allocation8] sm:$0xff]  }
 0x480   : > { %v1748_v54 = vpop.f32.mrf.mxu1  ;;  %3369 = vmatprep.subr.bf16.mxu0 %v3598_v37 }
 0x481   : > { %v1806_v55 = vmax.f32 %v1790_v51, 0.0  ;;  %v1749_v56 = vadd.f32 %v1748_v54, %v1603_v20  ;;  %v1820_v0 = vpack.c.bf16 %v1808_v52, %v1807_v57  ;;  %v1795_v23 = vadd.f32 %v4366_v17, %v1757_v58 }
 0x482   : > { %v3298_v60 = vpop.f32.mrf.mxu1 }
 0x483   : > { %v1760_v61 = vadd.f32 %v3298_v60, %v3266_v34  ;;  %v1819_v62 = vpack.c.bf16 %v1806_v55, %v1805_v5  ;;  %v1793_v13 = vadd.f32 %v4366_v17, %v1749_v56  ;;  %v1811_v7 = vmax.f32 %v1795_v23, 0.0  ;;  %v3594_v34 = vld [vmem:[%s4589_s14 + $0x10] sm:$0xff]   ;;  %3370 = vmatpush3.bf16.msra.mxu0 %v3598_v37  ;;  %v3605_v37 = vld [vmem:[#allocation10 + $0x38] sm:$0xff]  }
 0x484   : > { %v1751_v59 = vpop.f32.mrf.mxu1  ;;  %3345 = vmatprep.subr.bf16.mxu1 %v3594_v34  ;;  %3371 = vmatprep.subr.bf16.mxu0 %v3599_v38 }
 0x485   : > { %v1796_v15 = vadd.f32 %v4366_v17, %v1760_v61  ;;  %v1752_v22 = vadd.f32 %v1751_v59, %v1606_v45  ;;  %3323 = vmatprep.mubr.bf16.mxu0 %v1819_v62  ;;  %v1809_v3 = vmax.f32 %v1793_v13, 0.0  ;;  %3346 = vmatpush3.bf16.msra.mxu1 %v3594_v34 }
 0x486   : > { %v3301_v28 = vpop.f32.mrf.mxu1  ;;  %3324 = vmatmul.mubr.bf16.gmra.mxu0 %v1820_v0  ;;  %3347 = vmatprep.subr.bf16.mxu1 %v3595_v35 }
 0x487   : > { %v1794_v29 = vadd.f32 %v4366_v17, %v1752_v22  ;;  %v1812_v32 = vmax.f32 %v1796_v15, 0.0  ;;  %v1773_v8 = vadd.f32 %v3301_v28, %v3269_v53  ;;  %3372 = vmatpush3.bf16.msra.mxu0 %v3599_v38  ;;  %v3606_v38 = vld [vmem:[#allocation10 + $0x30] sm:$0xff]  }
 0x488   : > { %v1764_v2 = vpop.f32.mrf.mxu1  ;;  %3373 = vmatprep.subr.bf16.mxu0 %v3600_v39 }
 0x489   : > { %v1810_v4 = vmax.f32 %v1794_v29, 0.0  ;;  %v1765_v6 = vadd.f32 %v1764_v2, %v1619_v63  ;;  %v1822_v16 = vpack.c.bf16 %v1812_v32, %v1811_v7  ;;  %v1799_v21 = vadd.f32 %v4366_v17, %v1773_v8  ;;  %3348 = vmatpush3.bf16.msra.mxu1 %v3595_v35  ;;  %v3602_v35 = vld [vmem:[#allocation8 + $0x10] sm:$0xff]  }
 0x48a   : > { %v3302_v9 = vpop.f32.mrf.mxu1 }
 0x48b   : > { %v1776_v10 = vadd.f32 %v3302_v9, %v3270_v1  ;;  %v1821_v11 = vpack.c.bf16 %v1810_v4, %v1809_v3  ;;  %v1797_v18 = vadd.f32 %v4366_v17, %v1765_v6  ;;  %v1815_v30 = vmax.f32 %v1799_v21, 0.0  ;;  %3374 = vmatpush3.bf16.msra.mxu0 %v3600_v39  ;;  %v3607_v39 = vld [vmem:[#allocation10 + $0x28] sm:$0xff]  }
 0x48c   : > { %v1767_v14 = vpop.f32.mrf.mxu1  ;;  %3375 = vmatprep.subr.bf16.mxu0 %v3601_v40 }
 0x48d   : > { %v1800_v19 = vadd.f32 %v4366_v17, %v1776_v10  ;;  %v1768_v20 = vadd.f32 %v1767_v14, %v1622_v12  ;;  %3327 = vmatprep.mubr.bf16.mxu0 %v1821_v11  ;;  %v1813_v26 = vmax.f32 %v1797_v18, 0.0 }
 0x48e   : > { %3328 = vmatmul.mubr.bf16.gmra.mxu0 %v1822_v16 }
 0x48f   : > { %v1798_v24 = vadd.f32 %v4366_v17, %v1768_v20  ;;  %v1816_v25 = vmax.f32 %v1800_v19, 0.0  ;;  %v3596_v17 = vld [vmem:[%s4589_s14] sm:$0xff]   ;;  %3376 = vmatpush3.bf16.msra.mxu0 %v3601_v40 }
 0x490   : > { %3349 = vmatprep.subr.bf16.mxu1 %v3596_v17  ;;  %3377 = vmatprep.subr.bf16.mxu0 %v3602_v35  ;;  %v3608_v40 = vld [vmem:[#allocation10 + $0x20] sm:$0xff]  }
 0x491   : > { %v1814_v27 = vmax.f32 %v1798_v24, 0.0  ;;  %v1824_v33 = vpack.c.bf16 %v1816_v25, %v1815_v30  ;;  %3350 = vmatpush3.bf16.msra.mxu1 %v3596_v17  ;;  %v3603_v17 = vld [vmem:[#allocation8 + $0x8] sm:$0xff]  }
 0x492   : > { %3431 = vmatprep.subr.bf16.mxu1 %v3605_v37 }
 0x493   : > { %v1823_v31 = vpack.c.bf16 %v1814_v27, %v1813_v26  ;;  %3378 = vmatpush3.bf16.msra.mxu0 %v3602_v35 }
 0x494   : > { %3379 = vmatprep.subr.bf16.mxu0 %v3603_v17 }
 0x495   : > { %3331 = vmatprep.mubr.bf16.mxu0 %v1823_v31 }
 0x496   : > { %3332 = vmatmul.mubr.bf16.gmra.mxu0 %v1824_v33 }
 0x497   : > { %3380 = vmatpush3.bf16.msra.mxu0 %v3603_v17  ;;  %v3610_v17 = vld [vmem:[#allocation10 + $0x10] sm:$0xff]  }
 0x498   : > { %3381 = vmatprep.subr.bf16.mxu0 %v3604_v36 }
 0x49b   : > { %3382 = vmatpush3.bf16.msra.mxu0 %v3604_v36  ;;  %v3611_v36 = vld [vmem:[#allocation10 + $0x8] sm:$0xff]  }
 0x49c   : > { %3399 = vmatprep.subr.bf16.mxu0 %v3605_v37 }
 0x53e   : > { %v3321_v41 = vpop.f32.mrf.mxu0 }
 0x53f   : > { %v1939_v47 = vadd.f32 %v3321_v41, %v2933_v44  ;;  %v4396_v41 = vld [vmem:[#allocation10 + $0x18] sm:$0xff]  }
 0x540   : > { %v1930_v42 = vpop.f32.mrf.mxu0 }
 0x541   : > { %v1931_v45 = vadd.f32 %v2933_v44, %v1930_v42  ;;  %v1995_v54 = vmax.f32 %v1939_v47, 0.0 }
 0x542   : > { %v3322_v43 = vpop.f32.mrf.mxu0 }
 0x543   : > { %v1942_v46 = vadd.f32 %v3322_v43, %v2933_v44  ;;  %v1993_v52 = vmax.f32 %v1931_v45, 0.0  ;;  %v2942_v43 = vld [vmem:[%s4590_s15] ss:$0 sm:$0xff] }
 0x544   : > { %v1933_v48 = vpop.f32.mrf.mxu0 }
 0x545   : > { %v1934_v49 = vadd.f32 %v2933_v44, %v1933_v48  ;;  %v1996_v50 = vmax.f32 %v1942_v46, 0.0 }
 0x546   : > { %v3325_v51 = vpop.f32.mrf.mxu0 }
 0x547   : > { %v1994_v53 = vmax.f32 %v1934_v49, 0.0  ;;  %v2010_v56 = vpack.c.bf16 %v1996_v50, %v1995_v54  ;;  %v1955_v61 = vadd.f32 %v3325_v51, %v2933_v44 }
 0x548   : > { %v1946_v5 = vpop.f32.mrf.mxu0 }
 0x549   : > { %v2009_v55 = vpack.c.bf16 %v1994_v53, %v1993_v52  ;;  %v1947_v58 = vadd.f32 %v2933_v44, %v1946_v5  ;;  %v1999_v22 = vmax.f32 %v1955_v61, 0.0 }
 0x54a   : > { %v3326_v57 = vpop.f32.mrf.mxu0 }
 0x54b   : > { %v1958_v60 = vadd.f32 %v3326_v57, %v2933_v44  ;;  %3351 = vmatprep.mubr.bf16.mxu1 %v2009_v55  ;;  %v1997_v13 = vmax.f32 %v1947_v58, 0.0 }
 0x54c   : > { %v1949_v62 = vpop.f32.mrf.mxu0  ;;  %3352 = vmatmul.mubr.bf16.vlgmr.msra.gmra.mxu1 %v2010_v56 }
 0x54d   : > { %v1950_v63 = vadd.f32 %v2933_v44, %v1949_v62  ;;  %v2000_v59 = vmax.f32 %v1958_v60, 0.0  ;;  %3439 = vmatpush3.bf16.msra.mxu1 %v3605_v37 }
 0x54e   : > { %v3329_v0 = vpop.f32.mrf.mxu0  ;;  %3432 = vmatprep.subr.bf16.mxu1 %v3606_v38 }
 0x54f   : > { %v1998_v15 = vmax.f32 %v1950_v63, 0.0  ;;  %v2012_v29 = vpack.c.bf16 %v2000_v59, %v1999_v22  ;;  %v1971_v3 = vadd.f32 %v3329_v0, %v2933_v44 }
 0x550   : > { %v1962_v23 = vpop.f32.mrf.mxu0 }
 0x551   : > { %v2011_v28 = vpack.c.bf16 %v1998_v15, %v1997_v13  ;;  %v1963_v1 = vadd.f32 %v2933_v44, %v1962_v23  ;;  %v2003_v11 = vmax.f32 %v1971_v3, 0.0  ;;  %3440 = vmatpush3.bf16.msra.mxu1 %v3606_v38 }
 0x552   : > { %v3330_v32 = vpop.f32.mrf.mxu0  ;;  %3433 = vmatprep.subr.bf16.mxu1 %v3607_v39 }
 0x553   : > { %v1974_v2 = vadd.f32 %v3330_v32, %v2933_v44  ;;  %3355 = vmatprep.mubr.bf16.mxu1 %v2011_v28  ;;  %v2001_v9 = vmax.f32 %v1963_v1, 0.0 }
 0x554   : > { %v1965_v4 = vpop.f32.mrf.mxu0  ;;  %3356 = vmatmul.mubr.bf16.gmra.mxu1 %v2012_v29 }
 0x555   : > { %v1966_v6 = vadd.f32 %v2933_v44, %v1965_v4  ;;  %v2004_v7 = vmax.f32 %v1974_v2, 0.0  ;;  %3441 = vmatpush3.bf16.msra.mxu1 %v3607_v39 }
 0x556   : > { %v3333_v8 = vpop.f32.mrf.mxu0  ;;  %3434 = vmatprep.subr.bf16.mxu1 %v3608_v40 }
 0x557   : > { %v2002_v10 = vmax.f32 %v1966_v6, 0.0  ;;  %v2014_v16 = vpack.c.bf16 %v2004_v7, %v2003_v11  ;;  %v1987_v21 = vadd.f32 %v3333_v8, %v2933_v44 }
 0x558   : > { %v1978_v12 = vpop.f32.mrf.mxu0 }
 0x559   : > { %v2013_v14 = vpack.c.bf16 %v2002_v10, %v2001_v9  ;;  %v1979_v19 = vadd.f32 %v2933_v44, %v1978_v12  ;;  %v2007_v31 = vmax.f32 %v1987_v21, 0.0  ;;  %3442 = vmatpush3.bf16.msra.mxu1 %v3608_v40 }
 0x55a   : > { %v3334_v18 = vpop.f32.mrf.mxu0  ;;  %3435 = vmatprep.subr.bf16.mxu1 %v4396_v41 }
 0x55b   : > { %v1990_v20 = vadd.f32 %v3334_v18, %v2933_v44  ;;  %3359 = vmatprep.mubr.bf16.mxu1 %v2013_v14  ;;  %v2005_v27 = vmax.f32 %v1979_v19, 0.0 }
 0x55c   : > { %v1981_v24 = vpop.f32.mrf.mxu0  ;;  %3360 = vmatmul.mubr.bf16.gmra.mxu1 %v2014_v16 }
 0x55d   : > { %v1982_v25 = vadd.f32 %v2933_v44, %v1981_v24  ;;  %v2008_v26 = vmax.f32 %v1990_v20, 0.0  ;;  %3443 = vmatpush3.bf16.msra.mxu1 %v4396_v41 }
 0x55e   : > { %3436 = vmatprep.subr.bf16.mxu1 %v3610_v17 }
 0x55f   : > { %v2006_v30 = vmax.f32 %v1982_v25, 0.0  ;;  %v2016_v34 = vpack.c.bf16 %v2008_v26, %v2007_v31 }
 0x561   : > { %v2015_v33 = vpack.c.bf16 %v2006_v30, %v2005_v27  ;;  %3444 = vmatpush3.bf16.msra.mxu1 %v3610_v17 }
 0x562   : > { %3437 = vmatprep.subr.bf16.mxu1 %v3611_v36 }
 0x563   : > { %3363 = vmatprep.mubr.bf16.mxu1 %v2015_v33 }
 0x564   : > { %3364 = vmatmul.mubr.bf16.gmra.mxu1 %v2016_v34 }
 0x565   : > { %3445 = vmatpush3.bf16.msra.mxu1 %v3611_v36 }
 0x60c   : > { %v3353_v42 = vpop.f32.mrf.mxu1 }
 0x60d   : > { %v2131_v48 = vadd.f32 %v3353_v42, %v2942_v43 }
 0x60e   : > { %v2122_v44 = vpop.f32.mrf.mxu1 }
 0x60f   : > { %v2123_v46 = vadd.f32 %v2942_v43, %v2122_v44  ;;  %v2187_v5 = vmax.f32 %v2131_v48, 0.0 }
 0x610   : > { %v3354_v45 = vpop.f32.mrf.mxu1 }
 0x611   : > { %v2134_v47 = vadd.f32 %v3354_v45, %v2942_v43  ;;  %v2185_v53 = vmax.f32 %v2123_v46, 0.0 }
 0x612   : > { %v2125_v49 = vpop.f32.mrf.mxu1 }
 0x613   : > { %v2126_v50 = vadd.f32 %v2942_v43, %v2125_v49  ;;  %v2188_v51 = vmax.f32 %v2134_v47, 0.0 }
 0x614   : > { %v3357_v52 = vpop.f32.mrf.mxu1 }
 0x615   : > { %v2186_v54 = vmax.f32 %v2126_v50, 0.0  ;;  %v2202_v57 = vpack.c.bf16 %v2188_v51, %v2187_v5  ;;  %v2147_v62 = vadd.f32 %v3357_v52, %v2942_v43 }
 0x616   : > { %v2138_v55 = vpop.f32.mrf.mxu1 }
 0x617   : > { %v2201_v56 = vpack.c.bf16 %v2186_v54, %v2185_v53  ;;  %v2139_v60 = vadd.f32 %v2942_v43, %v2138_v55  ;;  %v2191_v23 = vmax.f32 %v2147_v62, 0.0 }
 0x618   : > { %v3358_v58 = vpop.f32.mrf.mxu1 }
 0x619   : > { %v2150_v61 = vadd.f32 %v3358_v58, %v2942_v43  ;;  %3383 = vmatprep.mubr.bf16.mxu0 %v2201_v56  ;;  %v2189_v15 = vmax.f32 %v2139_v60, 0.0 }
 0x61a   : > { %v2141_v63 = vpop.f32.mrf.mxu1  ;;  %3384 = vmatmul.mubr.bf16.vlgmr.msra.gmra.mxu0 %v2202_v57 }
 0x61b   : > { %v2142_v59 = vadd.f32 %v2942_v43, %v2141_v63  ;;  %3400 = vmatpush3.bf16.msra.mxu0 %v3605_v37  ;;  %v2192_v0 = vmax.f32 %v2150_v61, 0.0  ;;  %v3612_v37 = vld [vmem:[#allocation10] sm:$0xff]  }
 0x61c   : > { %v3361_v13 = vpop.f32.mrf.mxu1  ;;  %3401 = vmatprep.subr.bf16.mxu0 %v3606_v38  ;;  %3438 = vmatprep.subr.bf16.mxu1 %v3612_v37 }
 0x61d   : > { %v2190_v22 = vmax.f32 %v2142_v59, 0.0  ;;  %v2204_v32 = vpack.c.bf16 %v2192_v0, %v2191_v23  ;;  %v2163_v4 = vadd.f32 %v3361_v13, %v2942_v43  ;;  %3446 = vmatpush3.bf16.msra.mxu1 %v3612_v37 }
 0x61e   : > { %v2154_v28 = vpop.f32.mrf.mxu1 }
 0x61f   : > { %v2203_v29 = vpack.c.bf16 %v2190_v22, %v2189_v15  ;;  %3402 = vmatpush3.bf16.msra.mxu0 %v3606_v38  ;;  %v2155_v2 = vadd.f32 %v2942_v43, %v2154_v28  ;;  %v2195_v12 = vmax.f32 %v2163_v4, 0.0 }
 0x620   : > { %v3362_v1 = vpop.f32.mrf.mxu1  ;;  %3403 = vmatprep.subr.bf16.mxu0 %v3607_v39 }
 0x621   : > { %v2166_v3 = vadd.f32 %v3362_v1, %v2942_v43  ;;  %3387 = vmatprep.mubr.bf16.mxu0 %v2203_v29  ;;  %v2193_v10 = vmax.f32 %v2155_v2, 0.0 }
 0x622   : > { %v2157_v6 = vpop.f32.mrf.mxu1  ;;  %3388 = vmatmul.mubr.bf16.gmra.mxu0 %v2204_v32 }
 0x623   : > { %v2158_v7 = vadd.f32 %v2942_v43, %v2157_v6  ;;  %3404 = vmatpush3.bf16.msra.mxu0 %v3607_v39  ;;  %v2196_v8 = vmax.f32 %v2166_v3, 0.0 }
 0x624   : > { %v3365_v9 = vpop.f32.mrf.mxu1  ;;  %3405 = vmatprep.subr.bf16.mxu0 %v3608_v40 }
 0x625   : > { %v2194_v11 = vmax.f32 %v2158_v7, 0.0  ;;  %v2206_v18 = vpack.c.bf16 %v2196_v8, %v2195_v12  ;;  %v2179_v24 = vadd.f32 %v3365_v9, %v2942_v43 }
 0x626   : > { %v2170_v14 = vpop.f32.mrf.mxu1 }
 0x627   : > { %v2205_v16 = vpack.c.bf16 %v2194_v11, %v2193_v10  ;;  %3406 = vmatpush3.bf16.msra.mxu0 %v3608_v40  ;;  %v2171_v20 = vadd.f32 %v2942_v43, %v2170_v14  ;;  %v2199_v33 = vmax.f32 %v2179_v24, 0.0  ;;  %v2951_v40 = vld [vmem:[%s4592_s17] ss:$0 sm:$0xff] }
 0x628   : > { %v3366_v19 = vpop.f32.mrf.mxu1  ;;  %3407 = vmatprep.subr.bf16.mxu0 %v4396_v41 }
 0x629   : > { %v2182_v21 = vadd.f32 %v3366_v19, %v2942_v43  ;;  %3391 = vmatprep.mubr.bf16.mxu0 %v2205_v16  ;;  %v2197_v30 = vmax.f32 %v2171_v20, 0.0 }
 0x62a   : > { %v2173_v25 = vpop.f32.mrf.mxu1  ;;  %3392 = vmatmul.mubr.bf16.gmra.mxu0 %v2206_v18 }
 0x62b   : > { %v2174_v26 = vadd.f32 %v2942_v43, %v2173_v25  ;;  %3408 = vmatpush3.bf16.msra.mxu0 %v4396_v41  ;;  %v2200_v27 = vmax.f32 %v2182_v21, 0.0 }
 0x62c   : > { %3409 = vmatprep.subr.bf16.mxu0 %v3610_v17 }
 0x62d   : > { %v2198_v31 = vmax.f32 %v2174_v26, 0.0  ;;  %v2208_v35 = vpack.c.bf16 %v2200_v27, %v2199_v33 }
 0x62f   : > { %v2207_v34 = vpack.c.bf16 %v2198_v31, %v2197_v30  ;;  %3410 = vmatpush3.bf16.msra.mxu0 %v3610_v17  ;;  %v2960_v31 = vld [vmem:[%s4594_s19] ss:$0 sm:$0xff] }
 0x630   : > { %3411 = vmatprep.subr.bf16.mxu0 %v3611_v36 }
 0x631   : > { %3395 = vmatprep.mubr.bf16.mxu0 %v2207_v34 }
 0x632   : > { %3396 = vmatmul.mubr.bf16.gmra.mxu0 %v2208_v35 }
 0x633   : > { %3412 = vmatpush3.bf16.msra.mxu0 %v3611_v36 }
 0x634   : > { %3413 = vmatprep.subr.bf16.mxu0 %v3612_v37 }
 0x637   : > { %3414 = vmatpush3.bf16.msra.mxu0 %v3612_v37 }
 0x6da   : > { %v3385_v38 = vpop.f32.mrf.mxu0 }
 0x6db   : > { %v2323_v43 = vadd.f32 %v3385_v38, %v2951_v40 }
 0x6dc   : > { %v2314_v39 = vpop.f32.mrf.mxu0 }
 0x6dd   : > { %v2315_v42 = vadd.f32 %v2951_v40, %v2314_v39  ;;  %v2379_v51 = vmax.f32 %v2323_v43, 0.0 }
 0x6de   : > { %v3386_v41 = vpop.f32.mrf.mxu0 }
 0x6df   : > { %v2326_v44 = vadd.f32 %v3386_v41, %v2951_v40  ;;  %v2377_v49 = vmax.f32 %v2315_v42, 0.0 }
 0x6e0   : > { %v2317_v45 = vpop.f32.mrf.mxu0 }
 0x6e1   : > { %v2318_v46 = vadd.f32 %v2951_v40, %v2317_v45  ;;  %v2380_v47 = vmax.f32 %v2326_v44, 0.0 }
 0x6e2   : > { %v3389_v48 = vpop.f32.mrf.mxu0 }
 0x6e3   : > { %v2378_v50 = vmax.f32 %v2318_v46, 0.0  ;;  %v2394_v54 = vpack.c.bf16 %v2380_v47, %v2379_v51  ;;  %v2339_v57 = vadd.f32 %v3389_v48, %v2951_v40 }
 0x6e4   : > { %v2330_v52 = vpop.f32.mrf.mxu0 }
 0x6e5   : > { %v2393_v53 = vpack.c.bf16 %v2378_v50, %v2377_v49  ;;  %v2331_v55 = vadd.f32 %v2951_v40, %v2330_v52  ;;  %v2383_v0 = vmax.f32 %v2339_v57, 0.0 }
 0x6e6   : > { %v3390_v5 = vpop.f32.mrf.mxu0 }
 0x6e7   : > { %v2342_v56 = vadd.f32 %v3390_v5, %v2951_v40  ;;  %3415 = vmatprep.mubr.bf16.mxu0 %v2393_v53  ;;  %v2381_v63 = vmax.f32 %v2331_v55, 0.0 }
 0x6e8   : > { %v2333_v58 = vpop.f32.mrf.mxu0  ;;  %3416 = vmatmul.mubr.bf16.vlgmr.msra.gmra.mxu0 %v2394_v54 }
 0x6e9   : > { %v2334_v60 = vadd.f32 %v2951_v40, %v2333_v58  ;;  %v2384_v61 = vmax.f32 %v2342_v56, 0.0 }
 0x6ea   : > { %v3393_v62 = vpop.f32.mrf.mxu0 }
 0x6eb   : > { %v2382_v59 = vmax.f32 %v2334_v60, 0.0  ;;  %v2396_v22 = vpack.c.bf16 %v2384_v61, %v2383_v0  ;;  %v2355_v32 = vadd.f32 %v3393_v62, %v2951_v40 }
 0x6ec   : > { %v2346_v13 = vpop.f32.mrf.mxu0 }
 0x6ed   : > { %v2395_v15 = vpack.c.bf16 %v2382_v59, %v2381_v63  ;;  %v2347_v28 = vadd.f32 %v2951_v40, %v2346_v13  ;;  %v2387_v8 = vmax.f32 %v2355_v32, 0.0 }
 0x6ee   : > { %v3394_v23 = vpop.f32.mrf.mxu0 }
 0x6ef   : > { %v2358_v29 = vadd.f32 %v3394_v23, %v2951_v40  ;;  %3419 = vmatprep.mubr.bf16.mxu1 %v2395_v15  ;;  %v2385_v6 = vmax.f32 %v2347_v28, 0.0 }
 0x6f0   : > { %v2349_v1 = vpop.f32.mrf.mxu0  ;;  %3420 = vmatmul.mubr.bf16.vlgmr.msra.gmra.mxu1 %v2396_v22 }
 0x6f1   : > { %v2350_v2 = vadd.f32 %v2951_v40, %v2349_v1  ;;  %v2388_v3 = vmax.f32 %v2358_v29, 0.0 }
 0x6f2   : > { %v3397_v4 = vpop.f32.mrf.mxu0 }
 0x6f3   : > { %v2386_v7 = vmax.f32 %v2350_v2, 0.0  ;;  %v2398_v11 = vpack.c.bf16 %v2388_v3, %v2387_v8  ;;  %v2371_v18 = vadd.f32 %v3397_v4, %v2951_v40 }
 0x6f4   : > { %v2362_v9 = vpop.f32.mrf.mxu0 }
 0x6f5   : > { %v2397_v10 = vpack.c.bf16 %v2386_v7, %v2385_v6  ;;  %v2363_v14 = vadd.f32 %v2951_v40, %v2362_v9  ;;  %v2391_v26 = vmax.f32 %v2371_v18, 0.0 }
 0x6f6   : > { %v3398_v12 = vpop.f32.mrf.mxu0 }
 0x6f7   : > { %v2374_v16 = vadd.f32 %v3398_v12, %v2951_v40  ;;  %3423 = vmatprep.mubr.bf16.mxu1 %v2397_v10  ;;  %v2389_v24 = vmax.f32 %v2363_v14, 0.0 }
 0x6f8   : > { %v2365_v19 = vpop.f32.mrf.mxu0  ;;  %3424 = vmatmul.mubr.bf16.gmra.mxu1 %v2398_v11 }
 0x6f9   : > { %v2366_v20 = vadd.f32 %v2951_v40, %v2365_v19  ;;  %v2392_v21 = vmax.f32 %v2374_v16, 0.0 }
 0x6fb   : > { %v2390_v25 = vmax.f32 %v2366_v20, 0.0  ;;  %v2400_v30 = vpack.c.bf16 %v2392_v21, %v2391_v26 }
 0x6fd   : > { %v2399_v27 = vpack.c.bf16 %v2390_v25, %v2389_v24 }
 0x6ff   : > { %3427 = vmatprep.mubr.bf16.mxu1 %v2399_v27 }
 0x700   : > { %3428 = vmatmul.mubr.bf16.gmra.mxu1 %v2400_v30 }
 0x7a8   : > { %v3417_v33 = vpop.f32.mrf.mxu0 }
 0x7a9   : > { %v2515_v34 = vadd.f32 %v3417_v33, %v2960_v31 }
 0x7aa   : > { %v2506_v35 = vpop.f32.mrf.mxu0 }
 0x7ab   : > { %v2507_v17 = vadd.f32 %v2960_v31, %v2506_v35  ;;  %2573 = vmax.xlane.f32.xlu1 %v2515_v34 }
 0x7ac   : > { %v3418_v36 = vpop.f32.mrf.mxu0 }
 0x7ad   : > { %v2518_v37 = vadd.f32 %v3418_v36, %v2960_v31  ;;  %2569 = vmax.xlane.f32.xlu0 %v2507_v17 }
 0x7ae   : > { %v2509_v38 = vpop.f32.mrf.mxu0 }
 0x7af   : > { %v2510_v39 = vadd.f32 %v2960_v31, %v2509_v38  ;;  %2575 = vmax.xlane.f32.xlu1 %v2518_v37 }
 0x7b0   : > { %v3421_v40 = vpop.f32.mrf.mxu1 }
 0x7b1   : > { %2571 = vmax.xlane.f32.xlu0 %v2510_v39  ;;  %v2531_v42 = vadd.f32 %v3421_v40, %v2960_v31 }
 0x7b2   : > { %v2522_v41 = vpop.f32.mrf.mxu1 }
 0x7b3   : > { %v2523_v46 = vadd.f32 %v2960_v31, %v2522_v41 }
 0x7b4   : > { %v3422_v44 = vpop.f32.mrf.mxu1 }
 0x7b5   : > { %v2534_v43 = vadd.f32 %v3422_v44, %v2960_v31  ;;  %2581 = vmax.xlane.f32.xlu0 %v2531_v42 }
 0x7b6   : > { %v2525_v45 = vpop.f32.mrf.mxu1 }
 0x7b7   : > { %2583 = vmax.xlane.f32.xlu1 %v2534_v43  ;;  %v2526_v48 = vadd.f32 %v2960_v31, %v2525_v45 }
 0x7b8   : > { %v3425_v47 = vpop.f32.mrf.mxu1 }
 0x7b9   : > { %2577 = vmax.xlane.f32.xlu0 %v2523_v46  ;;  %v2547_v50 = vadd.f32 %v3425_v47, %v2960_v31 }
 0x7ba   : > { %v2538_v49 = vpop.f32.mrf.mxu1 }
 0x7bb   : > { %2579 = vmax.xlane.f32.xlu1 %v2526_v48  ;;  %v4413_v54 = vadd.f32 %v2960_v31, %v2538_v49 }
 0x7bc   : > { %v3426_v51 = vpop.f32.mrf.mxu1 }
 0x7bd   : > { %v4411_v52 = vadd.f32 %v3426_v51, %v2960_v31  ;;  %2589 = vmax.xlane.f32.xlu0 %v2547_v50 }
 0x7be   : > { %v2541_v53 = vpop.f32.mrf.mxu1 }
 0x7bf   : > { %2591 = vmax.xlane.f32.xlu1 %v4411_v52  ;;  %v4416_v55 = vadd.f32 %v2960_v31, %v2541_v53 }
 0x7c0   : > { %v3429_v5 = vpop.f32.mrf.mxu1 }
 0x7c1   : > { %2585 = vmax.xlane.f32.xlu0 %v4413_v54  ;;  %v4423_v61 = vadd.f32 %v3429_v5, %v2960_v31 }
 0x7c2   : > { %v2554_v56 = vpop.f32.mrf.mxu1 }
 0x7c3   : > { %v4419_v57 = vadd.f32 %v2960_v31, %v2554_v56  ;;  %2587 = vmax.xlane.f32.xlu1 %v4416_v55 }
 0x7c4   : > { %v3430_v58 = vpop.f32.mrf.mxu1 }
 0x7c5   : > { %2593 = vmax.xlane.f32.xlu0 %v4419_v57  ;;  %v4429_v63 = vadd.f32 %v3430_v58, %v2960_v31 }
 0x7c6   : > { %v2557_v60 = vpop.f32.mrf.mxu1 }
 0x7c7   : > { %v4425_v62 = vadd.f32 %v2960_v31, %v2557_v60 }
 0x7c9   : > { %2595 = vmax.xlane.f32.xlu1 %v4425_v62  ;;  %2597 = vmax.xlane.f32.xlu0 %v4423_v61 }
 0x7cd   : > { %2599 = vmax.xlane.f32.xlu1 %v4429_v63 }
 0x834   : > { %v2574_v59 = vpop.xlane.xlu1 %2573 }
 0x835   : > { %v2603_v0 = vsub.f32 %v2515_v34, %v2574_v59 }
 0x836   : > { %v2570_v13 = vpop.xlane.xlu0 %2569 }
 0x837   : > { %v2621_v15 = vmul.f32 1.442695, %v2603_v0  ;;  %v2601_v22 = vsub.f32 %v2507_v17, %v2570_v13 }
 0x838   : > { %v2576_v23 = vpop.xlane.xlu1 %2575 }
 0x839   : > { %3613 = vpow2.f32 %v2621_v15  ;;  %v2617_v28 = vmul.f32 1.442695, %v2601_v22  ;;  %v2604_v29 = vsub.f32 %v2518_v37, %v2576_v23 }
 0x83a   : > { %v2572_v32 = vpop.xlane.xlu0 %2571 }
 0x83b   : > { %v2623_v1 = vmul.f32 1.442695, %v2604_v29  ;;  %v2602_v2 = vsub.f32 %v2510_v39, %v2572_v32  ;;  %3615 = vpow2.f32 %v2617_v28 }
 0x83d   : > { %3617 = vpow2.f32 %v2623_v1  ;;  %v2619_v3 = vmul.f32 1.442695, %v2602_v2 }
 0x83e   : > { %v2582_v4 = vpop.xlane.xlu0 %2581 }
 0x83f   : > { %v2607_v6 = vsub.f32 %v2531_v42, %v2582_v4  ;;  %3619 = vpow2.f32 %v2619_v3 }
 0x840   : > { %v2584_v7 = vpop.xlane.xlu1 %2583 }
 0x841   : > { %v2629_v8 = vmul.f32 1.442695, %v2607_v6  ;;  %v2608_v9 = vsub.f32 %v2534_v43, %v2584_v7 }
 0x842   : > { %v2578_v10 = vpop.xlane.xlu0 %2577 }
 0x843   : > { %3621 = vpow2.f32 %v2629_v8  ;;  %v2631_v11 = vmul.f32 1.442695, %v2608_v9  ;;  %v2605_v12 = vsub.f32 %v2523_v46, %v2578_v10 }
 0x844   : > { %v2580_v14 = vpop.xlane.xlu1 %2579 }
 0x845   : > { %3623 = vpow2.f32 %v2631_v11  ;;  %v2625_v16 = vmul.f32 1.442695, %v2605_v12  ;;  %v2606_v18 = vsub.f32 %v2526_v48, %v2580_v14 }
 0x846   : > { %v4432_v19 = vpop.eup %3613  ;;  %v2590_v20 = vpop.xlane.xlu0 %2589 }
 0x847   : > { %3625 = vpow2.f32 %v2625_v16  ;;  %v2627_v21 = vmul.f32 1.442695, %v2606_v18  ;;  %v2611_v24 = vsub.f32 %v2547_v50, %v2590_v20  ;;  %2653 = vadd.xlane.f32.xlu0 %v4432_v19 }
 0x848   : > { %v2592_v25 = vpop.xlane.xlu1 %2591  ;;  %v4435_v26 = vpop.eup %3615 }
 0x849   : > { %3627 = vpow2.f32 %v2627_v21  ;;  %v2637_v27 = vmul.f32 1.442695, %v2611_v24  ;;  %v2612_v30 = vsub.f32 %v4411_v52, %v2592_v25 }
 0x84a   : > { %v4438_v31 = vpop.eup %3617  ;;  %v2586_v33 = vpop.xlane.xlu0 %2585 }
 0x84b   : > { %3629 = vpow2.f32 %v2637_v27  ;;  %v2639_v34 = vmul.f32 1.442695, %v2612_v30  ;;  %v2609_v35 = vsub.f32 %v4413_v54, %v2586_v33  ;;  %2655 = vadd.xlane.f32.xlu1 %v4438_v31  ;;  %2649 = vadd.xlane.f32.xlu0 %v4435_v26 }
 0x84c   : > { %v2588_v17 = vpop.xlane.xlu1 %2587  ;;  %v4444_v38 = vpop.eup %3619 }
 0x84d   : > { %3631 = vpow2.f32 %v2639_v34  ;;  %v2633_v36 = vmul.f32 1.442695, %v2609_v35  ;;  %v2610_v37 = vsub.f32 %v4416_v55, %v2588_v17 }
 0x84e   : > { %v2594_v39 = vpop.xlane.xlu0 %2593 }
 0x84f   : > { %3633 = vpow2.f32 %v2633_v36  ;;  %v2635_v40 = vmul.f32 1.442695, %v2610_v37  ;;  %v2613_v41 = vsub.f32 %v4419_v57, %v2594_v39  ;;  %2651 = vadd.xlane.f32.xlu1 %v4444_v38 }
 0x850   : > { %v4448_v42 = vpop.eup %3621 }
 0x851   : > { %3635 = vpow2.f32 %v2635_v40  ;;  %v2641_v44 = vmul.f32 1.442695, %v2613_v41  ;;  %2661 = vadd.xlane.f32.xlu0 %v4448_v42 }
 0x852   : > { %v4451_v43 = vpop.eup %3623  ;;  %v2596_v45 = vpop.xlane.xlu1 %2595 }
 0x853   : > { %v2598_v46 = vpop.xlane.xlu0 %2597  ;;  %3637 = vpow2.f32 %v2641_v44  ;;  %v2614_v47 = vsub.f32 %v4425_v62, %v2596_v45  ;;  %2663 = vadd.xlane.f32.xlu1 %v4451_v43 }
 0x854   : > { %v2615_v48 = vsub.f32 %v4423_v61, %v2598_v46  ;;  %v4456_v49 = vpop.eup %3625 }
 0x855   : > { %v2643_v50 = vmul.f32 1.442695, %v2614_v47  ;;  %2657 = vadd.xlane.f32.xlu0 %v4456_v49 }
 0x856   : > { %v2645_v51 = vmul.f32 1.442695, %v2615_v48  ;;  %v4459_v52 = vpop.eup %3627  ;;  %v2600_v53 = vpop.xlane.xlu1 %2599 }
 0x857   : > { %3639 = vpow2.f32 %v2643_v50  ;;  %v2616_v54 = vsub.f32 %v4429_v63, %v2600_v53  ;;  %2659 = vadd.xlane.f32.xlu1 %v4459_v52 }
 0x858   : > { %v4463_v5 = vpop.eup %3629  ;;  %3641 = vpow2.f32 %v2645_v51 }
 0x859   : > { %v2647_v55 = vmul.f32 1.442695, %v2616_v54  ;;  %2669 = vadd.xlane.f32.xlu0 %v4463_v5 }
 0x85a   : > { %v4466_v56 = vpop.eup %3631 }
 0x85b   : > { %3643 = vpow2.f32 %v2647_v55  ;;  %2671 = vadd.xlane.f32.xlu1 %v4466_v56 }
 0x85c   : > { %v4469_v57 = vpop.eup %3633 }
 0x85d   : > { %2665 = vadd.xlane.f32.xlu0 %v4469_v57 }
 0x85e   : > { %v4472_v58 = vpop.eup %3635 }
 0x85f   : > { %2667 = vadd.xlane.f32.xlu1 %v4472_v58 }
 0x860   : > { %v4475_v60 = vpop.eup %3637 }
 0x861   : > { %2673 = vadd.xlane.f32.xlu0 %v4475_v60 }
 0x864   : > { %v4478_v61 = vpop.eup %3639 }
 0x865   : > { %v4480_v62 = vpop.eup %3641  ;;  %2675 = vadd.xlane.f32.xlu1 %v4478_v61 }
 0x866   : > { %2677 = vadd.xlane.f32.xlu0 %v4480_v62 }
 0x868   : > { %v4484_v63 = vpop.eup %3643 }
 0x869   : > { %2679 = vadd.xlane.f32.xlu1 %v4484_v63 }
 0x8d0   : > { %v2654_v59 = vpop.xlane.xlu0 %2653 }
 0x8d1   : > { %3645 = vrcp.f32 %v2654_v59 }
 0x8d4   : > { %v2656_v0 = vpop.xlane.xlu1 %2655  ;;  %v2650_v13 = vpop.xlane.xlu0 %2649 }
 0x8d5   : > { %3647 = vrcp.f32 %v2656_v0 }
 0x8d6   : > { %3649 = vrcp.f32 %v2650_v13 }
 0x8d8   : > { %v2652_v15 = vpop.xlane.xlu1 %2651 }
 0x8d9   : > { %3651 = vrcp.f32 %v2652_v15 }
 0x8da   : > { %v2662_v22 = vpop.xlane.xlu0 %2661 }
 0x8db   : > { %3653 = vrcp.f32 %v2662_v22 }
 0x8dc   : > { %v2664_v23 = vpop.xlane.xlu1 %2663 }
 0x8dd   : > { %3655 = vrcp.f32 %v2664_v23 }
 0x8de   : > { %v3646_v28 = vpop.eup %3645  ;;  %v2658_v29 = vpop.xlane.xlu0 %2657 }
 0x8df   : > { %v2699_v32 = vmul.f32 %v3646_v28, %v4432_v19  ;;  %3657 = vrcp.f32 %v2658_v29 }
 0x8e0   : > { %v2660_v1 = vpop.xlane.xlu1 %2659 }
 0x8e1   : > { %2715 = vst [vmem:[%s4491_s23 + $0x10] sm:$0xff] %v2699_v32  ;;  %3659 = vrcp.f32 %v2660_v1 }
 0x8e2   : > { %v3648_v2 = vpop.eup %3647  ;;  %v2670_v3 = vpop.xlane.xlu0 %2669 }
 0x8e3   : > { %v3650_v4 = vpop.eup %3649  ;;  %v2700_v6 = vmul.f32 %v3648_v2, %v4438_v31  ;;  %3661 = vrcp.f32 %v2670_v3 }
 0x8e4   : > { %v2697_v7 = vmul.f32 %v3650_v4, %v4435_v26  ;;  %v2672_v8 = vpop.xlane.xlu1 %2671 }
 0x8e5   : > { %2716 = vst [vmem:[%s4491_s23 + $0x18] sm:$0xff] %v2700_v6  ;;  %3663 = vrcp.f32 %v2672_v8 }
 0x8e6   : > { %v3652_v9 = vpop.eup %3651  ;;  %2713 = vst [vmem:[%s4491_s23] sm:$0xff] %v2697_v7  ;;  %v2666_v10 = vpop.xlane.xlu0 %2665 }
 0x8e7   : > { %v2698_v11 = vmul.f32 %v3652_v9, %v4444_v38  ;;  %3665 = vrcp.f32 %v2666_v10 }
 0x8e8   : > { %v3654_v12 = vpop.eup %3653  ;;  %v2668_v14 = vpop.xlane.xlu1 %2667 }
 0x8e9   : > { %2714 = vst [vmem:[%s4491_s23 + $0x8] sm:$0xff] %v2698_v11  ;;  %v2703_v16 = vmul.f32 %v3654_v12, %v4448_v42  ;;  %3667 = vrcp.f32 %v2668_v14 }
 0x8ea   : > { %v3656_v18 = vpop.eup %3655  ;;  %v2674_v19 = vpop.xlane.xlu0 %2673 }
 0x8eb   : > { %2719 = vst [vmem:[%s4491_s23 + $0x30] sm:$0xff] %v2703_v16  ;;  %v2704_v20 = vmul.f32 %v3656_v18, %v4451_v43  ;;  %3669 = vrcp.f32 %v2674_v19 }
 0x8ec   : > { %v3658_v21 = vpop.eup %3657 }
 0x8ed   : > { %2720 = vst [vmem:[%s4491_s23 + $0x38] sm:$0xff] %v2704_v20  ;;  %v2701_v24 = vmul.f32 %v3658_v21, %v4456_v49 }
 0x8ee   : > { %v3660_v25 = vpop.eup %3659  ;;  %v2676_v26 = vpop.xlane.xlu1 %2675 }
 0x8ef   : > { %2717 = vst [vmem:[%s4491_s23 + $0x20] sm:$0xff] %v2701_v24  ;;  %v2702_v27 = vmul.f32 %v3660_v25, %v4459_v52  ;;  %3671 = vrcp.f32 %v2676_v26  ;;  %v2678_v30 = vpop.xlane.xlu0 %2677 }
 0x8f0   : > { %v3662_v31 = vpop.eup %3661  ;;  %3673 = vrcp.f32 %v2678_v30 }
 0x8f1   : > { %2718 = vst [vmem:[%s4491_s23 + $0x28] sm:$0xff] %v2702_v27  ;;  %v2707_v33 = vmul.f32 %v3662_v31, %v4463_v5 }
 0x8f2   : > { %v3664_v34 = vpop.eup %3663  ;;  %v2680_v35 = vpop.xlane.xlu1 %2679 }
 0x8f3   : > { %2723 = vst [vmem:[%s4491_s23 + $0x50] sm:$0xff] %v2707_v33  ;;  %v2708_v17 = vmul.f32 %v3664_v34, %v4466_v56  ;;  %3675 = vrcp.f32 %v2680_v35 }
 0x8f4   : > { %v3666_v36 = vpop.eup %3665 }
 0x8f5   : > { %2724 = vst [vmem:[%s4491_s23 + $0x58] sm:$0xff] %v2708_v17  ;;  %v2705_v37 = vmul.f32 %v3666_v36, %v4469_v57 }
 0x8f6   : > { %v3668_v38 = vpop.eup %3667 }
 0x8f7   : > { %2721 = vst [vmem:[%s4491_s23 + $0x40] sm:$0xff] %v2705_v37  ;;  %v2706_v39 = vmul.f32 %v3668_v38, %v4472_v58 }
 0x8f8   : > { %v3670_v40 = vpop.eup %3669 }
 0x8f9   : > { %2722 = vst [vmem:[%s4491_s23 + $0x48] sm:$0xff] %v2706_v39  ;;  %v2709_v41 = vmul.f32 %v3670_v40, %v4475_v60 }
 0x8fb   : > { %2725 = vst [vmem:[%s4491_s23 + $0x60] sm:$0xff] %v2709_v41 }
 0x8fc   : > { %v3672_v42 = vpop.eup %3671 }
 0x8fd   : > { %v3674_v44 = vpop.eup %3673  ;;  %v2710_v43 = vmul.f32 %v3672_v42, %v4478_v61 }
 0x8fe   : > { %v2711_v45 = vmul.f32 %v3674_v44, %v4480_v62 }
 0x8ff   : > { %2726 = vst [vmem:[%s4491_s23 + $0x68] sm:$0xff] %v2710_v43 }
 0x900   : > { %v3676_v46 = vpop.eup %3675  ;;  %2727 = vst [vmem:[%s4491_s23 + $0x70] sm:$0xff] %v2711_v45 }
 0x901   : > { %v2712_v47 = vmul.f32 %v3676_v46, %v4484_v63 }
 0x903   : > { %2728 = vst [vmem:[%s4491_s23 + $0x78] sm:$0xff] %v2712_v47 }
 0x904   : > { %3820 = shalt.err (!%p3817_p11)
}
 0x905   : > { %s3821_s1 = scalar_lea.hbm %s4527_s30, 2048  ;;  %s3825_s16 = scalar_lea.hbm %s4639_s3, 4096 }
 0x906   : > { %p3822_p0 = scmp.ne.s32.totalorder %s4527_s30, %s3821_s1  ;;  %p3826_p12 = scmp.lt.s32.totalorder %s4527_s30, %s4639_s3 }
 0x907   : > { %p3827_p10 = scmp.lt.s32.totalorder %s3825_s16, %s3821_s1 }
 0x908   : > { %p3823_p1 = pnand %p3822_p0, %p4034_p5 }
 0x909   : > { %p3828_p2 = por %p3827_p10, %p3826_p12 }
 0x90a   : > { %p3824_p3 = pneg %p3823_p1 }
 0x90c   : > { %p3829_p4 = pnand %p3828_p2, %p3824_p3 }
 0x90e   : > { %3832 = shalt.err (!%p3829_p4)
}
 0x90f   : > { %s3889_s25 = smov 128   ;;  %s3890_s29 = smov 8  }
 0x910   : > { %3467 = dma.vmem_to_hbm [thread:$0]  (%p4034_p5), %s4529_s4, 2048, %s4527_s30, %s4535_s2, %s3889_s25, %s3889_s25, %s3890_s29  }
 0x911 PF: > { %s4640_s26 = sld [smem:[#allocation18_spill]] }
 0x912   : > { %s4641_s0 = sld [smem:[#allocation16_spill]] }
 0x917   : > { %p3499_p9 = scmp.ge.s32.totalorder %s4640_s26, 2 }
 0x918   : > { %s2758_s23 = sand.u32 1, %s4641_s0  }
 0x919   : > { %p3486_p7 = pnand %p3499_p9, %p4038_p6  ;;  %s2759_s1 = scalar_lea.sflag [#allocation4], %s2758_s23 }
 0x91b   : > { %p3487_p8 = pneg %p3486_p7 }
 0x91d   : > { %3862 = dma.done.wait (%p3487_p8), %s2759_s1, 2048  }
 0x91e   : > { %3864 = vsyncadd (%p3487_p8), %s2759_s1, 4294965248  ;;  %s4643_s24 = sld [smem:[#allocation19_spill]]  ;;  %s4646_s1 = smov %s3871_s22 }
 0x91f   : > { %s4644_s16 = sld [smem:[#allocation17_spill]] }
 0x920   : > { %s4645_s23 = sld [smem:[#allocation20_spill]] }
 0x924   : > { %p33_p13 = scmp.ge.s32.totalorder %s4643_s24, 4  }
 0x925   : > { %s4647_s22 = smov %s4644_s16 }
 0x926   :  { %35 = sbr.rel (!%p33_p13) target bundleno = 14 (0xe), region = 156 }
 0x92b   :  { %2764 = vsyncpa [#allocation3], 1 }
 0x92c   :  { %2766 = vsyncpa [#allocation3 + $0x1], 1 }
 0x92d   :  { %2767 = vsyncpa [#allocation6], 1 }
 0x92e   :  { %2768 = vsyncpa [#allocation9], 1 }
 0x92f   :  { %2769 = vsyncpa [#allocation4], 1 }
 0x930   :  { %2771 = vsyncpa [#allocation4 + $0x1], 1 }

</bundles_post_ra>
